<compile_context>
chip_gen: v7x
topology: tpu7x:2x2x1
jax: 0.10.0
libtpu: 0.0.40
codegen_flags: <defaults>
</compile_context>

<pallas_src>
import functools
import math

import jax
import jax.numpy as jnp
from jax import lax
from jax.experimental import pallas as pl
from jax.experimental.pallas import tpu as pltpu

# ---------------- config (small, GPT2-like) ----------------
VOCAB = 128
MAX_POS = 32
HIDDEN = 64
NUM_HEADS = 4
HEAD_DIM = HIDDEN // NUM_HEADS
INNER = 4 * HIDDEN
NUM_LAYERS = 2
LN_EPS = 1e-5
SEQ = 8            # tokens in a single causal (prefill) sequence

NEG_INF = -1e30

# ---- packed per-layer slab layout (column offsets 128-lane aligned) ----
QKV_OFF = 0                      # W_qkv: [H, 3H]  cols   0:192
FC_OFF = 256                     # W_fc : [H, I]   cols 256:512
AP_OFF = 512                     # W_ap : [H, H]   cols 512:576
W_IN_COLS = 576
VEC_COLS = 256
# vector slab rows
ROW_LN1_W, ROW_LN1_B, ROW_B_QKV, ROW_B_AP = 0, 1, 2, 3
ROW_LN2_W, ROW_LN2_B, ROW_B_FC, ROW_B_MP = 4, 5, 6, 7


# ---------------- shared math helpers ----------------
def _layernorm(x, w, b):
    mu = jnp.mean(x, axis=-1, keepdims=True)
    var = jnp.mean((x - mu) ** 2, axis=-1, keepdims=True)
    return (x - mu) * lax.rsqrt(var + LN_EPS) * w + b


def _new_gelu(x):
    # NewGELU: 0.5*x*(1+tanh(sqrt(2/pi)*(x+0.044715*x^3)))
    c = math.sqrt(2.0 / math.pi)
    return 0.5 * x * (1.0 + jnp.tanh(c * (x + 0.044715 * x * x * x)))


# ---------------- fused Pallas kernel (all layers + ln_f + lm head) ----------
def gpt2_fused_kernel(x_emb_ref, mask_ref, w_in_ref, w_mp_ref, vec_ref,
                      lnf_w_ref, lnf_b_ref, wte_t_ref,
                      o_ref,
                      x_sc):
    H, NH, HD, I = HIDDEN, NUM_HEADS, HEAD_DIM, INNER
    layer = pl.program_id(0)
    last = pl.num_programs(0) - 1

    # Initialize the resident activation from the embeddings on the first step.
    @pl.when(layer == 0)
    def _():
        x_sc[...] = x_emb_ref[...]

    x = x_sc[...]                                               # [T, H] f32

    # ---- ln_1 ----
    h = _layernorm(x,
                   vec_ref[ROW_LN1_W:ROW_LN1_W + 1, 0:H],
                   vec_ref[ROW_LN1_B:ROW_LN1_B + 1, 0:H])

    # ---- fused QKV projection: one lane-dense matmul (scale pre-folded) ----
    w_qkv = w_in_ref[:, QKV_OFF:QKV_OFF + 3 * H].astype(jnp.float32)   # [H,3H]
    qkv = jnp.dot(h, w_qkv, preferred_element_type=jnp.float32)
    qkv = qkv + vec_ref[ROW_B_QKV:ROW_B_QKV + 1, 0:3 * H]              # [T,3H]

    # ---- per-head causal attention on tiny [T, T] tiles ----
    mask = mask_ref[...]                     # additive causal bias (hoisted)
    ctx_heads = []
    for n in range(NH):                      # static unroll, NH=4
        qn = qkv[:, n * HD:(n + 1) * HD]
        kn = qkv[:, H + n * HD:H + (n + 1) * HD]
        vn = qkv[:, 2 * H + n * HD:2 * H + (n + 1) * HD]
        s = lax.dot_general(qn, kn, (((1,), (1,)), ((), ())),
                            preferred_element_type=jnp.float32)        # [T, T]
        s = s + mask
        m = jnp.max(s, axis=-1, keepdims=True)
        p = jnp.exp(s - m)
        denom = jnp.sum(p, axis=-1, keepdims=True)
        p = p * pl.reciprocal(denom, approx=True)                      # EUP, ~free
        ctx_heads.append(jnp.dot(p, vn, preferred_element_type=jnp.float32))
    ctx = jnp.concatenate(ctx_heads, axis=-1)                          # [T, H]

    # ---- attention c_proj: single [T,H] x [H,H] matmul ----
    w_ap = w_in_ref[:, AP_OFF:AP_OFF + H].astype(jnp.float32)
    attn = jnp.dot(ctx, w_ap, preferred_element_type=jnp.float32)
    attn = attn + vec_ref[ROW_B_AP:ROW_B_AP + 1, 0:H]
    x = x + attn

    # ---- ln_2 + MLP (c_fc -> NewGELU -> c_proj) ----
    h2 = _layernorm(x,
                    vec_ref[ROW_LN2_W:ROW_LN2_W + 1, 0:H],
                    vec_ref[ROW_LN2_B:ROW_LN2_B + 1, 0:H])
    w_fc = w_in_ref[:, FC_OFF:FC_OFF + I].astype(jnp.float32)          # [H, I]
    f = jnp.dot(h2, w_fc, preferred_element_type=jnp.float32)
    f = _new_gelu(f + vec_ref[ROW_B_FC:ROW_B_FC + 1, 0:I])
    w_mp = w_mp_ref[...].astype(jnp.float32)                           # [I, H]
    f = jnp.dot(f, w_mp, preferred_element_type=jnp.float32)
    f = f + vec_ref[ROW_B_MP:ROW_B_MP + 1, 0:H]
    x = x + f

    x_sc[...] = x

    # ---- final LayerNorm + tied LM head (lane-dense [T, VOCAB] output) ----
    @pl.when(layer == last)
    def _():
        hf = _layernorm(x, lnf_w_ref[...], lnf_b_ref[...])
        o_ref[...] = jnp.dot(hf, wte_t_ref[...],
                             preferred_element_type=jnp.float32)


# ---------------- BlockSpecs ----------------
def _const_spec(*shape):
    n = len(shape)
    return pl.BlockSpec(shape, lambda l, n=n: (0,) * n)


def _per_layer_spec(*shape):
    n = len(shape)
    return pl.BlockSpec((None,) + shape, lambda l, n=n: (l,) + (0,) * n)


# ---------------- wrapper ----------------
def gpt2_lm_head_forward(input_ids, positions, packed):
    # Embedding lookups (gathers) are glue and stay in plain JAX.
    x_emb = (jnp.take(packed['wte'], input_ids, axis=0)
             + jnp.take(packed['wpe'], positions, axis=0)).astype(jnp.float32)
    T = x_emb.shape[0]

    # Hoisted causal mask as an additive bias constant.
    row = lax.broadcasted_iota(jnp.int32, (T, T), 0)
    col = lax.broadcasted_iota(jnp.int32, (T, T), 1)
    mask_bias = jnp.where(col <= row, 0.0, NEG_INF).astype(jnp.float32)

    in_specs = [
        _const_spec(T, HIDDEN),               # x_emb
        _const_spec(T, T),                    # causal mask bias
        _per_layer_spec(HIDDEN, W_IN_COLS),   # per-layer matrix slab (bf16)
        _per_layer_spec(INNER, HIDDEN),       # per-layer W_mp slab   (bf16)
        _per_layer_spec(8, VEC_COLS),         # per-layer bias/LN slab (f32)
        _const_spec(1, HIDDEN),               # lnf_w
        _const_spec(1, HIDDEN),               # lnf_b
        _const_spec(HIDDEN, VOCAB),           # wte_t (tied LM head, [H, V])
    ]
    out_spec = _const_spec(T, VOCAB)

    logits = pl.pallas_call(
        gpt2_fused_kernel,
        out_shape=jax.ShapeDtypeStruct((T, VOCAB), jnp.float32),
        grid_spec=pltpu.PrefetchScalarGridSpec(
            num_scalar_prefetch=0,
            grid=(NUM_LAYERS,),
            in_specs=in_specs,
            out_specs=out_spec,
            scratch_shapes=[pltpu.VMEM((T, HIDDEN), jnp.float32)],
        ),
        compiler_params=pltpu.CompilerParams(
            dimension_semantics=("arbitrary",)),
    )(x_emb, mask_bias,
      packed['w_in'], packed['w_mp'], packed['vec'],
      packed['lnf_w'], packed['lnf_b'], packed['wte_t'])
    return logits


# ---------------- params (canonical GPT-2 layout) ----------------
def init_params(key):
    L, H, I, V = NUM_LAYERS, HIDDEN, INNER, VOCAB
    ks = jax.random.split(key, 16)

    def nrm(k, shape):
        return 0.02 * jax.random.normal(k, shape, dtype=jnp.float32)

    def nrm_bf16(k, shape):
        # Matmul weights are streamed in bf16; keep the canonical copy
        # bf16-representable so kernel and reference see identical values.
        return nrm(k, shape).astype(jnp.bfloat16).astype(jnp.float32)

    return dict(
        wte=nrm(ks[0], (V, H)),
        wpe=nrm(ks[1], (MAX_POS, H)),
        ln1_w=1.0 + nrm(ks[2], (L, H)),
        ln1_b=nrm(ks[3], (L, H)),
        w_qkv=nrm_bf16(ks[4], (L, H, 3 * H)),
        b_qkv=nrm(ks[5], (L, 3 * H)),
        w_ap=nrm_bf16(ks[6], (L, H, H)),
        b_ap=nrm(ks[7], (L, H)),
        ln2_w=1.0 + nrm(ks[8], (L, H)),
        ln2_b=nrm(ks[9], (L, H)),
        w_fc=nrm_bf16(ks[10], (L, H, I)),
        b_fc=nrm(ks[11], (L, I)),
        w_mp=nrm_bf16(ks[12], (L, I, H)),
        b_mp=nrm(ks[13], (L, H)),
        lnf_w=1.0 + nrm(ks[14], (H,)),
        lnf_b=nrm(ks[15], (H,)),
    )


def pack_params(p):
    """One-time (load-time) weight transform: pack per-layer weights into
    1 bf16 matrix slab + 1 bf16 W_mp slab + 1 f32 vector slab; fold
    1/sqrt(head_dim) into Q; pre-transpose the tied LM head."""
    L, H, I = NUM_LAYERS, HIDDEN, INNER
    scale = HEAD_DIM ** -0.5                        # 0.25 (exact power of two)

    w_qkv = p['w_qkv'].at[:, :, 0:H].multiply(scale)
    b_qkv = p['b_qkv'].at[:, 0:H].multiply(scale)

    w_in = jnp.zeros((L, H, W_IN_COLS), jnp.float32)
    w_in = w_in.at[:, :, QKV_OFF:QKV_OFF + 3 * H].set(w_qkv)
    w_in = w_in.at[:, :, FC_OFF:FC_OFF + I].set(p['w_fc'])
    w_in = w_in.at[:, :, AP_OFF:AP_OFF + H].set(p['w_ap'])

    vec = jnp.zeros((L, 8, VEC_COLS), jnp.float32)
    vec = vec.at[:, ROW_LN1_W, 0:H].set(p['ln1_w'])
    vec = vec.at[:, ROW_LN1_B, 0:H].set(p['ln1_b'])
    vec = vec.at[:, ROW_B_QKV, 0:3 * H].set(b_qkv)
    vec = vec.at[:, ROW_B_AP, 0:H].set(p['b_ap'])
    vec = vec.at[:, ROW_LN2_W, 0:H].set(p['ln2_w'])
    vec = vec.at[:, ROW_LN2_B, 0:H].set(p['ln2_b'])
    vec = vec.at[:, ROW_B_FC, 0:I].set(p['b_fc'])
    vec = vec.at[:, ROW_B_MP, 0:H].set(p['b_mp'])

    return dict(
        wte=p['wte'], wpe=p['wpe'],
        w_in=w_in.astype(jnp.bfloat16),
        w_mp=p['w_mp'].astype(jnp.bfloat16),
        vec=vec,
        lnf_w=p['lnf_w'].reshape(1, H),
        lnf_b=p['lnf_b'].reshape(1, H),
        wte_t=jnp.asarray(p['wte'].T),              # tied LM head, [H, V]
    )


# ---------------- pure-JAX reference (conventional GPT-2 formulation) --------
def reference_forward(input_ids, positions, p):
    H, NH, HD = HIDDEN, NUM_HEADS, HEAD_DIM
    x = (jnp.take(p['wte'], input_ids, axis=0)
         + jnp.take(p['wpe'], positions, axis=0)).astype(jnp.float32)
    T = x.shape[0]
    row = lax.broadcasted_iota(jnp.int32, (T, T), 0)
    col = lax.broadcasted_iota(jnp.int32, (T, T), 1)
    mask_bias = jnp.where(col <= row, 0.0, NEG_INF).astype(jnp.float32)
    scale = HD ** -0.5

    for l in range(NUM_LAYERS):
        h = _layernorm(x, p['ln1_w'][l], p['ln1_b'][l])
        qkv = h @ p['w_qkv'][l] + p['b_qkv'][l]
        q, k, v = jnp.split(qkv, 3, axis=-1)
        outs = []
        for n in range(NH):
            sl = slice(n * HD, (n + 1) * HD)
            s = (q[:, sl] @ k[:, sl].T) * scale + mask_bias
            pr = jax.nn.softmax(s, axis=-1)
            outs.append(pr @ v[:, sl])
        attn = jnp.concatenate(outs, axis=-1)
        x = x + attn @ p['w_ap'][l] + p['b_ap'][l]

        h2 = _layernorm(x, p['ln2_w'][l], p['ln2_b'][l])
        f = _new_gelu(h2 @ p['w_fc'][l] + p['b_fc'][l])
        x = x + f @ p['w_mp'][l] + p['b_mp'][l]

    xf = _layernorm(x, p['lnf_w'], p['lnf_b'])
    return xf @ p['wte'].T


if __name__ == "__main__":
    key = jax.random.PRNGKey(0)
    pkey, ikey = jax.random.split(key)
    params = init_params(pkey)
    packed = pack_params(params)        # load-time weight transform

    input_ids = jax.random.randint(ikey, (SEQ,), 0, VOCAB, dtype=jnp.int32)
    positions = jnp.arange(SEQ, dtype=jnp.int32)

    logits = gpt2_lm_head_forward(input_ids, positions, packed)
    jax.block_until_ready(logits)

    ref = reference_forward(input_ids, positions, params)
    assert logits.shape == (SEQ, VOCAB)
    assert jnp.allclose(logits, ref, rtol=2e-3, atol=2e-3), "mismatch vs reference"

    print("KERNEL_OK")
</pallas_src>

<mosaic_0001>
module attributes {stable_mosaic.version = 11 : i64} {
  func.func @gpt2_fused_kernel(%arg0: i32, %arg1: memref<8x64xf32, #tpu.memory_space<vmem>>, %arg2: memref<8x8xf32, #tpu.memory_space<vmem>>, %arg3: memref<1x64x576xbf16, #tpu.memory_space<vmem>>, %arg4: memref<1x256x64xbf16, #tpu.memory_space<vmem>>, %arg5: memref<1x8x256xf32, #tpu.memory_space<vmem>>, %arg6: memref<1x64xf32, #tpu.memory_space<vmem>>, %arg7: memref<1x64xf32, #tpu.memory_space<vmem>>, %arg8: memref<64x128xf32, #tpu.memory_space<vmem>>, %arg9: memref<8x128xf32, #tpu.memory_space<vmem>>, %arg10: memref<8x64xf32, #tpu.memory_space<vmem>>) attributes {dimension_semantics = [#tpu.dimension_semantics<arbitrary>], iteration_bounds = array<i64: 2>, scalar_prefetch = 0 : i64, scratch_operands = 1 : i64, tpu.core_type = #tpu.core_type<tc>, window_params = [{pipeline_mode = #tpu.pipeline_mode<synchronous>, transform_indices = @transform_0, window_bounds = array<i64: 8, 64>}, {pipeline_mode = #tpu.pipeline_mode<synchronous>, transform_indices = @transform_1, window_bounds = array<i64: 8, 8>}, {transform_indices = @transform_2, window_bounds = array<i64: 1, 64, 576>}, {transform_indices = @transform_3, window_bounds = array<i64: 1, 256, 64>}, {transform_indices = @transform_4, window_bounds = array<i64: 1, 8, 256>}, {pipeline_mode = #tpu.pipeline_mode<synchronous>, transform_indices = @transform_5, window_bounds = array<i64: 1, 64>}, {pipeline_mode = #tpu.pipeline_mode<synchronous>, transform_indices = @transform_6, window_bounds = array<i64: 1, 64>}, {pipeline_mode = #tpu.pipeline_mode<synchronous>, transform_indices = @transform_7, window_bounds = array<i64: 64, 128>}, {pipeline_mode = #tpu.pipeline_mode<synchronous>, transform_indices = @transform_8, window_bounds = array<i64: 8, 128>}]} {
    %c0_i32 = arith.constant 0 : i32
    %0 = arith.cmpi eq, %arg0, %c0_i32 : i32
    %1 = arith.extui %0 : i1 to i32
    %c0_i32_0 = arith.constant 0 : i32
    %2 = arith.cmpi ne, %1, %c0_i32_0 : i32
    scf.if %2 {
      %c0_67 = arith.constant 0 : index
      %c0_68 = arith.constant 0 : index
      %173 = vector.load %arg1[%c0_67, %c0_68] : memref<8x64xf32, #tpu.memory_space<vmem>>, vector<8x64xf32>
      %c0_69 = arith.constant 0 : index
      %c0_70 = arith.constant 0 : index
      %174 = vector.load %arg10[%c0_69, %c0_70] : memref<8x64xf32, #tpu.memory_space<vmem>>, vector<8x64xf32>
      tpu.vector_store %arg10[%c0_69, %c0_70], %173 {strides = array<i32>} : memref<8x64xf32, #tpu.memory_space<vmem>>, vector<8x64xf32>,
    } else {
    }
    %c0 = arith.constant 0 : index
    %c0_1 = arith.constant 0 : index
    %3 = vector.load %arg10[%c0, %c0_1] : memref<8x64xf32, #tpu.memory_space<vmem>>, vector<8x64xf32>
    %c0_2 = arith.constant 0 : index
    %c0_3 = arith.constant 0 : index
    %c0_4 = arith.constant 0 : index
    %4 = vector.load %arg5[%c0_2, %c0_3, %c0_4] : memref<1x8x256xf32, #tpu.memory_space<vmem>>, vector<1x1x64xf32>
    %5 = vector.shape_cast %4 : vector<1x1x64xf32> to vector<1x64xf32>
    %c0_5 = arith.constant 0 : index
    %c1 = arith.constant 1 : index
    %c0_6 = arith.constant 0 : index
    %6 = vector.load %arg5[%c0_5, %c1, %c0_6] : memref<1x8x256xf32, #tpu.memory_space<vmem>>, vector<1x1x64xf32>
    %7 = vector.shape_cast %6 : vector<1x1x64xf32> to vector<1x64xf32>
    %cst = arith.constant dense<0.000000e+00> : vector<8xf32>
    %8 = vector.multi_reduction <add>, %3, %cst [1] : vector<8x64xf32> to vector<8xf32>
    %9 = vector.shape_cast %8 : vector<8xf32> to vector<8x1xf32>
    %cst_7 = arith.constant 6.400000e+01 : f32
    %10 = vector.broadcast %cst_7 : f32 to vector<8x1xf32>
    %11 = arith.divf %9, %10 : vector<8x1xf32>
    %12 = vector.broadcast %11 : vector<8x1xf32> to vector<8x64xf32>
    %13 = arith.subf %3, %12 : vector<8x64xf32>
    %14 = arith.mulf %13, %13 : vector<8x64xf32>
    %cst_8 = arith.constant dense<0.000000e+00> : vector<8xf32>
    %15 = vector.multi_reduction <add>, %14, %cst_8 [1] : vector<8x64xf32> to vector<8xf32>
    %16 = vector.shape_cast %15 : vector<8xf32> to vector<8x1xf32>
    %cst_9 = arith.constant 6.400000e+01 : f32
    %17 = vector.broadcast %cst_9 : f32 to vector<8x1xf32>
    %18 = arith.divf %16, %17 : vector<8x1xf32>
    %19 = vector.broadcast %11 : vector<8x1xf32> to vector<8x64xf32>
    %20 = arith.subf %3, %19 : vector<8x64xf32>
    %cst_10 = arith.constant 9.99999974E-6 : f32
    %21 = vector.broadcast %cst_10 : f32 to vector<8x1xf32>
    %22 = arith.addf %18, %21 : vector<8x1xf32>
    %23 = math.rsqrt %22 : vector<8x1xf32>
    %24 = vector.broadcast %23 : vector<8x1xf32> to vector<8x64xf32>
    %25 = arith.mulf %20, %24 : vector<8x64xf32>
    %26 = vector.broadcast %5 : vector<1x64xf32> to vector<8x64xf32>
    %27 = arith.mulf %25, %26 : vector<8x64xf32>
    %28 = vector.broadcast %7 : vector<1x64xf32> to vector<8x64xf32>
    %29 = arith.addf %27, %28 : vector<8x64xf32>
    %c0_11 = arith.constant 0 : index
    %c0_12 = arith.constant 0 : index
    %c0_13 = arith.constant 0 : index
    %30 = vector.load %arg3[%c0_11, %c0_12, %c0_13] : memref<1x64x576xbf16, #tpu.memory_space<vmem>>, vector<1x64x192xbf16>
    %31 = vector.shape_cast %30 : vector<1x64x192xbf16> to vector<64x192xbf16>
    %32 = arith.extf %31 : vector<64x192xbf16> to vector<64x192xf32>
    %cst_14 = arith.constant dense<0.000000e+00> : vector<8x192xf32>
    %33 = tpu.matmul %29, %32, %cst_14 {dimension_numbers = #tpu.dot_dimension_numbers<[1], [0], [0], [1], [0, 0, 1, 1], [], []>} : vector<8x64xf32>, vector<64x192xf32>, vector<8x192xf32> -> vector<8x192xf32>
    %c0_15 = arith.constant 0 : index
    %c2 = arith.constant 2 : index
    %c0_16 = arith.constant 0 : index
    %34 = vector.load %arg5[%c0_15, %c2, %c0_16] : memref<1x8x256xf32, #tpu.memory_space<vmem>>, vector<1x1x192xf32>
    %35 = vector.shape_cast %34 : vector<1x1x192xf32> to vector<1x192xf32>
    %36 = vector.broadcast %35 : vector<1x192xf32> to vector<8x192xf32>
    %37 = arith.addf %33, %36 : vector<8x192xf32>
    %c0_17 = arith.constant 0 : index
    %c0_18 = arith.constant 0 : index
    %38 = vector.load %arg2[%c0_17, %c0_18] : memref<8x8xf32, #tpu.memory_space<vmem>>, vector<8x8xf32>
    %39 = vector.extract_strided_slice %37 {offsets = [0, 0], sizes = [8, 16], strides = [1, 1]} : vector<8x192xf32> to vector<8x16xf32>
    %40 = vector.extract_strided_slice %37 {offsets = [0, 64], sizes = [8, 16], strides = [1, 1]} : vector<8x192xf32> to vector<8x16xf32>
    %41 = vector.extract_strided_slice %37 {offsets = [0, 128], sizes = [8, 16], strides = [1, 1]} : vector<8x192xf32> to vector<8x16xf32>
    %cst_19 = arith.constant dense<0.000000e+00> : vector<8x8xf32>
    %42 = tpu.matmul %39, %40, %cst_19 {dimension_numbers = #tpu.dot_dimension_numbers<[1], [1], [0], [0], [0, 0, 1, 0], [], []>} : vector<8x16xf32>, vector<8x16xf32>, vector<8x8xf32> -> vector<8x8xf32>
    %43 = arith.addf %42, %38 : vector<8x8xf32>
    %cst_20 = arith.constant dense<0xFF800000> : vector<8xf32>
    %44 = vector.multi_reduction <maximumf>, %43, %cst_20 [1] : vector<8x8xf32> to vector<8xf32>
    %45 = vector.shape_cast %44 : vector<8xf32> to vector<8x1xf32>
    %46 = vector.broadcast %45 : vector<8x1xf32> to vector<8x8xf32>
    %47 = arith.subf %43, %46 : vector<8x8xf32>
    %48 = math.exp %47 : vector<8x8xf32>
    %cst_21 = arith.constant dense<0.000000e+00> : vector<8xf32>
    %49 = vector.multi_reduction <add>, %48, %cst_21 [1] : vector<8x8xf32> to vector<8xf32>
    %50 = vector.shape_cast %49 : vector<8xf32> to vector<8x1xf32>
    %51 = tpu.reciprocal %50 {approx = true} : vector<8x1xf32> -> vector<8x1xf32>
    %52 = vector.broadcast %51 : vector<8x1xf32> to vector<8x8xf32>
    %53 = arith.mulf %48, %52 : vector<8x8xf32>
    %cst_22 = arith.constant dense<0.000000e+00> : vector<8x16xf32>
    %54 = tpu.matmul %53, %41, %cst_22 {dimension_numbers = #tpu.dot_dimension_numbers<[1], [0], [0], [1], [0, 0, 1, 1], [], []>} : vector<8x8xf32>, vector<8x16xf32>, vector<8x16xf32> -> vector<8x16xf32>
    %55 = vector.extract_strided_slice %37 {offsets = [0, 16], sizes = [8, 16], strides = [1, 1]} : vector<8x192xf32> to vector<8x16xf32>
    %56 = vector.extract_strided_slice %37 {offsets = [0, 80], sizes = [8, 16], strides = [1, 1]} : vector<8x192xf32> to vector<8x16xf32>
    %57 = vector.extract_strided_slice %37 {offsets = [0, 144], sizes = [8, 16], strides = [1, 1]} : vector<8x192xf32> to vector<8x16xf32>
    %cst_23 = arith.constant dense<0.000000e+00> : vector<8x8xf32>
    %58 = tpu.matmul %55, %56, %cst_23 {dimension_numbers = #tpu.dot_dimension_numbers<[1], [1], [0], [0], [0, 0, 1, 0], [], []>} : vector<8x16xf32>, vector<8x16xf32>, vector<8x8xf32> -> vector<8x8xf32>
    %59 = arith.addf %58, %38 : vector<8x8xf32>
    %cst_24 = arith.constant dense<0xFF800000> : vector<8xf32>
    %60 = vector.multi_reduction <maximumf>, %59, %cst_24 [1] : vector<8x8xf32> to vector<8xf32>
    %61 = vector.shape_cast %60 : vector<8xf32> to vector<8x1xf32>
    %62 = vector.broadcast %61 : vector<8x1xf32> to vector<8x8xf32>
    %63 = arith.subf %59, %62 : vector<8x8xf32>
    %64 = math.exp %63 : vector<8x8xf32>
    %cst_25 = arith.constant dense<0.000000e+00> : vector<8xf32>
    %65 = vector.multi_reduction <add>, %64, %cst_25 [1] : vector<8x8xf32> to vector<8xf32>
    %66 = vector.shape_cast %65 : vector<8xf32> to vector<8x1xf32>
    %67 = tpu.reciprocal %66 {approx = true} : vector<8x1xf32> -> vector<8x1xf32>
    %68 = vector.broadcast %67 : vector<8x1xf32> to vector<8x8xf32>
    %69 = arith.mulf %64, %68 : vector<8x8xf32>
    %cst_26 = arith.constant dense<0.000000e+00> : vector<8x16xf32>
    %70 = tpu.matmul %69, %57, %cst_26 {dimension_numbers = #tpu.dot_dimension_numbers<[1], [0], [0], [1], [0, 0, 1, 1], [], []>} : vector<8x8xf32>, vector<8x16xf32>, vector<8x16xf32> -> vector<8x16xf32>
    %71 = vector.extract_strided_slice %37 {offsets = [0, 32], sizes = [8, 16], strides = [1, 1]} : vector<8x192xf32> to vector<8x16xf32>
    %72 = vector.extract_strided_slice %37 {offsets = [0, 96], sizes = [8, 16], strides = [1, 1]} : vector<8x192xf32> to vector<8x16xf32>
    %73 = vector.extract_strided_slice %37 {offsets = [0, 160], sizes = [8, 16], strides = [1, 1]} : vector<8x192xf32> to vector<8x16xf32>
    %cst_27 = arith.constant dense<0.000000e+00> : vector<8x8xf32>
    %74 = tpu.matmul %71, %72, %cst_27 {dimension_numbers = #tpu.dot_dimension_numbers<[1], [1], [0], [0], [0, 0, 1, 0], [], []>} : vector<8x16xf32>, vector<8x16xf32>, vector<8x8xf32> -> vector<8x8xf32>
    %75 = arith.addf %74, %38 : vector<8x8xf32>
    %cst_28 = arith.constant dense<0xFF800000> : vector<8xf32>
    %76 = vector.multi_reduction <maximumf>, %75, %cst_28 [1] : vector<8x8xf32> to vector<8xf32>
    %77 = vector.shape_cast %76 : vector<8xf32> to vector<8x1xf32>
    %78 = vector.broadcast %77 : vector<8x1xf32> to vector<8x8xf32>
    %79 = arith.subf %75, %78 : vector<8x8xf32>
    %80 = math.exp %79 : vector<8x8xf32>
    %cst_29 = arith.constant dense<0.000000e+00> : vector<8xf32>
    %81 = vector.multi_reduction <add>, %80, %cst_29 [1] : vector<8x8xf32> to vector<8xf32>
    %82 = vector.shape_cast %81 : vector<8xf32> to vector<8x1xf32>
    %83 = tpu.reciprocal %82 {approx = true} : vector<8x1xf32> -> vector<8x1xf32>
    %84 = vector.broadcast %83 : vector<8x1xf32> to vector<8x8xf32>
    %85 = arith.mulf %80, %84 : vector<8x8xf32>
    %cst_30 = arith.constant dense<0.000000e+00> : vector<8x16xf32>
    %86 = tpu.matmul %85, %73, %cst_30 {dimension_numbers = #tpu.dot_dimension_numbers<[1], [0], [0], [1], [0, 0, 1, 1], [], []>} : vector<8x8xf32>, vector<8x16xf32>, vector<8x16xf32> -> vector<8x16xf32>
    %87 = vector.extract_strided_slice %37 {offsets = [0, 48], sizes = [8, 16], strides = [1, 1]} : vector<8x192xf32> to vector<8x16xf32>
    %88 = vector.extract_strided_slice %37 {offsets = [0, 112], sizes = [8, 16], strides = [1, 1]} : vector<8x192xf32> to vector<8x16xf32>
    %89 = vector.extract_strided_slice %37 {offsets = [0, 176], sizes = [8, 16], strides = [1, 1]} : vector<8x192xf32> to vector<8x16xf32>
    %cst_31 = arith.constant dense<0.000000e+00> : vector<8x8xf32>
    %90 = tpu.matmul %87, %88, %cst_31 {dimension_numbers = #tpu.dot_dimension_numbers<[1], [1], [0], [0], [0, 0, 1, 0], [], []>} : vector<8x16xf32>, vector<8x16xf32>, vector<8x8xf32> -> vector<8x8xf32>
    %91 = arith.addf %90, %38 : vector<8x8xf32>
    %cst_32 = arith.constant dense<0xFF800000> : vector<8xf32>
    %92 = vector.multi_reduction <maximumf>, %91, %cst_32 [1] : vector<8x8xf32> to vector<8xf32>
    %93 = vector.shape_cast %92 : vector<8xf32> to vector<8x1xf32>
    %94 = vector.broadcast %93 : vector<8x1xf32> to vector<8x8xf32>
    %95 = arith.subf %91, %94 : vector<8x8xf32>
    %96 = math.exp %95 : vector<8x8xf32>
    %cst_33 = arith.constant dense<0.000000e+00> : vector<8xf32>
    %97 = vector.multi_reduction <add>, %96, %cst_33 [1] : vector<8x8xf32> to vector<8xf32>
    %98 = vector.shape_cast %97 : vector<8xf32> to vector<8x1xf32>
    %99 = tpu.reciprocal %98 {approx = true} : vector<8x1xf32> -> vector<8x1xf32>
    %100 = vector.broadcast %99 : vector<8x1xf32> to vector<8x8xf32>
    %101 = arith.mulf %96, %100 : vector<8x8xf32>
    %cst_34 = arith.constant dense<0.000000e+00> : vector<8x16xf32>
    %102 = tpu.matmul %101, %89, %cst_34 {dimension_numbers = #tpu.dot_dimension_numbers<[1], [0], [0], [1], [0, 0, 1, 1], [], []>} : vector<8x8xf32>, vector<8x16xf32>, vector<8x16xf32> -> vector<8x16xf32>
    %103 = tpu.concatenate %54, %70, %86, %102 in 1 : vector<8x16xf32>, vector<8x16xf32>, vector<8x16xf32>, vector<8x16xf32> -> vector<8x64xf32>
    %c0_35 = arith.constant 0 : index
    %c0_36 = arith.constant 0 : index
    %c512 = arith.constant 512 : index
    %104 = vector.load %arg3[%c0_35, %c0_36, %c512] : memref<1x64x576xbf16, #tpu.memory_space<vmem>>, vector<1x64x64xbf16>
    %105 = vector.shape_cast %104 : vector<1x64x64xbf16> to vector<64x64xbf16>
    %106 = arith.extf %105 : vector<64x64xbf16> to vector<64x64xf32>
    %cst_37 = arith.constant dense<0.000000e+00> : vector<8x64xf32>
    %107 = tpu.matmul %103, %106, %cst_37 {dimension_numbers = #tpu.dot_dimension_numbers<[1], [0], [0], [1], [0, 0, 1, 1], [], []>} : vector<8x64xf32>, vector<64x64xf32>, vector<8x64xf32> -> vector<8x64xf32>
    %c0_38 = arith.constant 0 : index
    %c3 = arith.constant 3 : index
    %c0_39 = arith.constant 0 : index
    %108 = vector.load %arg5[%c0_38, %c3, %c0_39] : memref<1x8x256xf32, #tpu.memory_space<vmem>>, vector<1x1x64xf32>
    %109 = vector.shape_cast %108 : vector<1x1x64xf32> to vector<1x64xf32>
    %110 = vector.broadcast %109 : vector<1x64xf32> to vector<8x64xf32>
    %111 = arith.addf %107, %110 : vector<8x64xf32>
    %112 = arith.addf %3, %111 : vector<8x64xf32>
    %c0_40 = arith.constant 0 : index
    %c4 = arith.constant 4 : index
    %c0_41 = arith.constant 0 : index
    %113 = vector.load %arg5[%c0_40, %c4, %c0_41] : memref<1x8x256xf32, #tpu.memory_space<vmem>>, vector<1x1x64xf32>
    %114 = vector.shape_cast %113 : vector<1x1x64xf32> to vector<1x64xf32>
    %c0_42 = arith.constant 0 : index
    %c5 = arith.constant 5 : index
    %c0_43 = arith.constant 0 : index
    %115 = vector.load %arg5[%c0_42, %c5, %c0_43] : memref<1x8x256xf32, #tpu.memory_space<vmem>>, vector<1x1x64xf32>
    %116 = vector.shape_cast %115 : vector<1x1x64xf32> to vector<1x64xf32>
    %cst_44 = arith.constant dense<0.000000e+00> : vector<8xf32>
    %117 = vector.multi_reduction <add>, %112, %cst_44 [1] : vector<8x64xf32> to vector<8xf32>
    %118 = vector.shape_cast %117 : vector<8xf32> to vector<8x1xf32>
    %cst_45 = arith.constant 6.400000e+01 : f32
    %119 = vector.broadcast %cst_45 : f32 to vector<8x1xf32>
    %120 = arith.divf %118, %119 : vector<8x1xf32>
    %121 = vector.broadcast %120 : vector<8x1xf32> to vector<8x64xf32>
    %122 = arith.subf %112, %121 : vector<8x64xf32>
    %123 = arith.mulf %122, %122 : vector<8x64xf32>
    %cst_46 = arith.constant dense<0.000000e+00> : vector<8xf32>
    %124 = vector.multi_reduction <add>, %123, %cst_46 [1] : vector<8x64xf32> to vector<8xf32>
    %125 = vector.shape_cast %124 : vector<8xf32> to vector<8x1xf32>
    %cst_47 = arith.constant 6.400000e+01 : f32
    %126 = vector.broadcast %cst_47 : f32 to vector<8x1xf32>
    %127 = arith.divf %125, %126 : vector<8x1xf32>
    %128 = vector.broadcast %120 : vector<8x1xf32> to vector<8x64xf32>
    %129 = arith.subf %112, %128 : vector<8x64xf32>
    %cst_48 = arith.constant 9.99999974E-6 : f32
    %130 = vector.broadcast %cst_48 : f32 to vector<8x1xf32>
    %131 = arith.addf %127, %130 : vector<8x1xf32>
    %132 = math.rsqrt %131 : vector<8x1xf32>
    %133 = vector.broadcast %132 : vector<8x1xf32> to vector<8x64xf32>
    %134 = arith.mulf %129, %133 : vector<8x64xf32>
    %135 = vector.broadcast %114 : vector<1x64xf32> to vector<8x64xf32>
    %136 = arith.mulf %134, %135 : vector<8x64xf32>
    %137 = vector.broadcast %116 : vector<1x64xf32> to vector<8x64xf32>
    %138 = arith.addf %136, %137 : vector<8x64xf32>
    %c0_49 = arith.constant 0 : index
    %c0_50 = arith.constant 0 : index
    %c256 = arith.constant 256 : index
    %139 = vector.load %arg3[%c0_49, %c0_50, %c256] : memref<1x64x576xbf16, #tpu.memory_space<vmem>>, vector<1x64x256xbf16>
    %140 = vector.shape_cast %139 : vector<1x64x256xbf16> to vector<64x256xbf16>
    %141 = arith.extf %140 : vector<64x256xbf16> to vector<64x256xf32>
    %cst_51 = arith.constant dense<0.000000e+00> : vector<8x256xf32>
    %142 = tpu.matmul %138, %141, %cst_51 {dimension_numbers = #tpu.dot_dimension_numbers<[1], [0], [0], [1], [0, 0, 1, 1], [], []>} : vector<8x64xf32>, vector<64x256xf32>, vector<8x256xf32> -> vector<8x256xf32>
    %c0_52 = arith.constant 0 : index
    %c6 = arith.constant 6 : index
    %c0_53 = arith.constant 0 : index
    %143 = vector.load %arg5[%c0_52, %c6, %c0_53] : memref<1x8x256xf32, #tpu.memory_space<vmem>>, vector<1x1x256xf32>
    %144 = vector.shape_cast %143 : vector<1x1x256xf32> to vector<1x256xf32>
    %145 = vector.broadcast %144 : vector<1x256xf32> to vector<8x256xf32>
    %146 = arith.addf %142, %145 : vector<8x256xf32>
    %cst_54 = arith.constant 5.000000e-01 : f32
    %147 = vector.broadcast %cst_54 : f32 to vector<8x256xf32>
    %148 = arith.mulf %147, %146 : vector<8x256xf32>
    %cst_55 = arith.constant 4.471500e-02 : f32
    %149 = vector.broadcast %cst_55 : f32 to vector<8x256xf32>
    %150 = arith.mulf %149, %146 : vector<8x256xf32>
    %151 = arith.mulf %150, %146 : vector<8x256xf32>
    %152 = arith.mulf %151, %146 : vector<8x256xf32>
    %153 = arith.addf %146, %152 : vector<8x256xf32>
    %cst_56 = arith.constant 0.797884583 : f32
    %154 = vector.broadcast %cst_56 : f32 to vector<8x256xf32>
    %155 = arith.mulf %154, %153 : vector<8x256xf32>
    %156 = math.tanh %155 : vector<8x256xf32>
    %cst_57 = arith.constant 1.000000e+00 : f32
    %157 = vector.broadcast %cst_57 : f32 to vector<8x256xf32>
    %158 = arith.addf %157, %156 : vector<8x256xf32>
    %159 = arith.mulf %148, %158 : vector<8x256xf32>
    %c0_58 = arith.constant 0 : index
    %c0_59 = arith.constant 0 : index
    %c0_60 = arith.constant 0 : index
    %160 = vector.load %arg4[%c0_58, %c0_59, %c0_60] : memref<1x256x64xbf16, #tpu.memory_space<vmem>>, vector<1x256x64xbf16>
    %161 = vector.shape_cast %160 : vector<1x256x64xbf16> to vector<256x64xbf16>
    %162 = arith.extf %161 : vector<256x64xbf16> to vector<256x64xf32>
    %cst_61 = arith.constant dense<0.000000e+00> : vector<8x64xf32>
    %163 = tpu.matmul %159, %162, %cst_61 {dimension_numbers = #tpu.dot_dimension_numbers<[1], [0], [0], [1], [0, 0, 1, 1], [], []>} : vector<8x256xf32>, vector<256x64xf32>, vector<8x64xf32> -> vector<8x64xf32>
    %c0_62 = arith.constant 0 : index
    %c7 = arith.constant 7 : index
    %c0_63 = arith.constant 0 : index
    %164 = vector.load %arg5[%c0_62, %c7, %c0_63] : memref<1x8x256xf32, #tpu.memory_space<vmem>>, vector<1x1x64xf32>
    %165 = vector.shape_cast %164 : vector<1x1x64xf32> to vector<1x64xf32>
    %166 = vector.broadcast %165 : vector<1x64xf32> to vector<8x64xf32>
    %167 = arith.addf %163, %166 : vector<8x64xf32>
    %168 = arith.addf %112, %167 : vector<8x64xf32>
    %c0_64 = arith.constant 0 : index
    %c0_65 = arith.constant 0 : index
    %169 = vector.load %arg10[%c0_64, %c0_65] : memref<8x64xf32, #tpu.memory_space<vmem>>, vector<8x64xf32>
    tpu.vector_store %arg10[%c0_64, %c0_65], %168 {strides = array<i32>} : memref<8x64xf32, #tpu.memory_space<vmem>>, vector<8x64xf32>,
    %c1_i32 = arith.constant 1 : i32
    %170 = arith.cmpi eq, %arg0, %c1_i32 : i32
    %171 = arith.extui %170 : i1 to i32
    %c0_i32_66 = arith.constant 0 : i32
    %172 = arith.cmpi ne, %171, %c0_i32_66 : i32
    scf.if %172 {
      %c0_67 = arith.constant 0 : index
      %c0_68 = arith.constant 0 : index
      %173 = vector.load %arg6[%c0_67, %c0_68] : memref<1x64xf32, #tpu.memory_space<vmem>>, vector<1x64xf32>
      %c0_69 = arith.constant 0 : index
      %c0_70 = arith.constant 0 : index
      %174 = vector.load %arg7[%c0_69, %c0_70] : memref<1x64xf32, #tpu.memory_space<vmem>>, vector<1x64xf32>
      %cst_71 = arith.constant dense<0.000000e+00> : vector<8xf32>
      %175 = vector.multi_reduction <add>, %168, %cst_71 [1] : vector<8x64xf32> to vector<8xf32>
      %176 = vector.shape_cast %175 : vector<8xf32> to vector<8x1xf32>
      %cst_72 = arith.constant 6.400000e+01 : f32
      %177 = vector.broadcast %cst_72 : f32 to vector<8x1xf32>
      %178 = arith.divf %176, %177 : vector<8x1xf32>
      %179 = vector.broadcast %178 : vector<8x1xf32> to vector<8x64xf32>
      %180 = arith.subf %168, %179 : vector<8x64xf32>
      %181 = arith.mulf %180, %180 : vector<8x64xf32>
      %cst_73 = arith.constant dense<0.000000e+00> : vector<8xf32>
      %182 = vector.multi_reduction <add>, %181, %cst_73 [1] : vector<8x64xf32> to vector<8xf32>
      %183 = vector.shape_cast %182 : vector<8xf32> to vector<8x1xf32>
      %cst_74 = arith.constant 6.400000e+01 : f32
      %184 = vector.broadcast %cst_74 : f32 to vector<8x1xf32>
      %185 = arith.divf %183, %184 : vector<8x1xf32>
      %186 = vector.broadcast %178 : vector<8x1xf32> to vector<8x64xf32>
      %187 = arith.subf %168, %186 : vector<8x64xf32>
      %cst_75 = arith.constant 9.99999974E-6 : f32
      %188 = vector.broadcast %cst_75 : f32 to vector<8x1xf32>
      %189 = arith.addf %185, %188 : vector<8x1xf32>
      %190 = math.rsqrt %189 : vector<8x1xf32>
      %191 = vector.broadcast %190 : vector<8x1xf32> to vector<8x64xf32>
      %192 = arith.mulf %187, %191 : vector<8x64xf32>
      %193 = vector.broadcast %173 : vector<1x64xf32> to vector<8x64xf32>
      %194 = arith.mulf %192, %193 : vector<8x64xf32>
      %195 = vector.broadcast %174 : vector<1x64xf32> to vector<8x64xf32>
      %196 = arith.addf %194, %195 : vector<8x64xf32>
      %c0_76 = arith.constant 0 : index
      %c0_77 = arith.constant 0 : index
      %197 = vector.load %arg8[%c0_76, %c0_77] : memref<64x128xf32, #tpu.memory_space<vmem>>, vector<64x128xf32>
      %cst_78 = arith.constant dense<0.000000e+00> : vector<8x128xf32>
      %198 = tpu.matmul %196, %197, %cst_78 {dimension_numbers = #tpu.dot_dimension_numbers<[1], [0], [0], [1], [0, 0, 1, 1], [], []>} : vector<8x64xf32>, vector<64x128xf32>, vector<8x128xf32> -> vector<8x128xf32>
      %c0_79 = arith.constant 0 : index
      %c0_80 = arith.constant 0 : index
      %199 = vector.load %arg9[%c0_79, %c0_80] : memref<8x128xf32, #tpu.memory_space<vmem>>, vector<8x128xf32>
      tpu.vector_store %arg9[%c0_79, %c0_80], %198 {strides = array<i32>} : memref<8x128xf32, #tpu.memory_space<vmem>>, vector<8x128xf32>,
    } else {
    }
    return
  }
  func.func @transform_0(%arg0: i32) -> (i32, i32) {
    %c0_i32 = arith.constant 0 : i32
    %c0_i32_0 = arith.constant 0 : i32
    %c0_i32_1 = arith.constant 0 : i32
    return %c0_i32, %c0_i32_0 : i32, i32
  }
  func.func @transform_1(%arg0: i32) -> (i32, i32) {
    %c0_i32 = arith.constant 0 : i32
    %c0_i32_0 = arith.constant 0 : i32
    %c0_i32_1 = arith.constant 0 : i32
    return %c0_i32, %c0_i32_0 : i32, i32
  }
  func.func @transform_2(%arg0: i32) -> (i32, i32, i32) {
    %c0_i32 = arith.constant 0 : i32
    %c0_i32_0 = arith.constant 0 : i32
    %c0_i32_1 = arith.constant 0 : i32
    return %arg0, %c0_i32, %c0_i32_0 : i32, i32, i32
  }
  func.func @transform_3(%arg0: i32) -> (i32, i32, i32) {
    %c0_i32 = arith.constant 0 : i32
    %c0_i32_0 = arith.constant 0 : i32
    %c0_i32_1 = arith.constant 0 : i32
    return %arg0, %c0_i32, %c0_i32_0 : i32, i32, i32
  }
  func.func @transform_4(%arg0: i32) -> (i32, i32, i32) {
    %c0_i32 = arith.constant 0 : i32
    %c0_i32_0 = arith.constant 0 : i32
    %c0_i32_1 = arith.constant 0 : i32
    return %arg0, %c0_i32, %c0_i32_0 : i32, i32, i32
  }
  func.func @transform_5(%arg0: i32) -> (i32, i32) {
    %c0_i32 = arith.constant 0 : i32
    %c0_i32_0 = arith.constant 0 : i32
    %c0_i32_1 = arith.constant 0 : i32
    return %c0_i32, %c0_i32_0 : i32, i32
  }
  func.func @transform_6(%arg0: i32) -> (i32, i32) {
    %c0_i32 = arith.constant 0 : i32
    %c0_i32_0 = arith.constant 0 : i32
    %c0_i32_1 = arith.constant 0 : i32
    return %c0_i32, %c0_i32_0 : i32, i32
  }
  func.func @transform_7(%arg0: i32) -> (i32, i32) {
    %c0_i32 = arith.constant 0 : i32
    %c0_i32_0 = arith.constant 0 : i32
    %c0_i32_1 = arith.constant 0 : i32
    return %c0_i32, %c0_i32_0 : i32, i32
  }
  func.func @transform_8(%arg0: i32) -> (i32, i32) {
    %c0_i32 = arith.constant 0 : i32
    %c0_i32_0 = arith.constant 0 : i32
    %c0_i32_1 = arith.constant 0 : i32
    return %c0_i32, %c0_i32_0 : i32, i32
  }
}

</mosaic_0001>

<bundles_post_ra>
// kernel: tpu_custom_call.1
= control target key start
LH: loop header
LB: loop body
LE: loop exit
PB: predicated region body
PF: predicated region fallthrough
CT: control target
= control target key end

     0   :  { %13 = vsyncpa [#allocation4], 0  ;;  %s2905_s0 = inlined_call_operand.hbm [shape: f32[8,64], index: 0, kind: input, shape index: {}]   ;;  %s2906_s1 = inlined_call_operand.hbm [shape: f32[8,8], index: 1, kind: input, shape index: {}]   ;;  %s2907_s2 = inlined_call_operand.vmem [shape: bf16[2,64,576], index: 2, kind: input, shape index: {}]   ;;  %s2908_s3 = inlined_call_operand.vmem [shape: bf16[2,256,64], index: 3, kind: input, shape index: {}]   ;;  %s2909_s4 = inlined_call_operand.hbm [shape: f32[2,8,256], index: 4, kind: input, shape index: {}]   ;;  %s2910_s5 = inlined_call_operand.vmem [shape: f32[1,64], index: 5, kind: input, shape index: {}]   ;;  %s2911_s6 = inlined_call_operand.vmem [shape: f32[1,64], index: 6, kind: input, shape index: {}]   ;;  %s2912_s7 = inlined_call_operand.vmem [shape: f32[64,128], index: 7, kind: input, shape index: {}]   ;;  %s2913_s8 = inlined_call_operand.hbm [shape: f32[8,128], index: 8, kind: output, shape index: {}]  }
   0x1   :  { %14 = vsyncpa [#allocation7], 0 }
   0x2   :  { %15 = vsyncpa [#allocation5], 0  ;;  %s2511_s27 = smov 0   ;;  %s2513_s28 = smov 0  }
   0x3   :  { %s2515_s29 = smov 0   ;;  %s2517_s30 = smov 0  }
   0x4 LB: > { %s2530_s9 = sadd.s32 4294967295, %s2447_s30   ;;  %p135_p0 = scmp.ne.s32.totalorder %s2439_s28, %s2435_s27  ;;  %s2447_s30 = sphi %s2517_s30, %s2931_s30   ;;  %s2443_s29 = sphi %s2515_s29, %s2930_s29   ;;  %s2439_s28 = sphi %s2513_s28, %s2929_s28   ;;  %s2435_s27 = sphi %s2511_s27, %s2928_s27  }
   0x5   : > { %p2914_p1 = scmp.eq.s32.totalorder %s2530_s9, 0  ;;  %p1778_p2 = scmp.ge.s32.totalorder %s2447_s30, 1 }
   0x6   : > { %p230_p3 = scmp.lt.s32.totalorder %s2447_s30, 3  ;;  %s2449_s12 = smov [#allocation3]  }
   0x7   : > { %p2539_p5 = por %p2914_p1, %p135_p0  ;;  %s243_s13 = sshll.u32 %s2449_s12, 4  ;;  %s244_s13 = int_to_ptr.vmem [resolvable:$true] %s243_s13 }
   0x8   : > { %p2543_p6 = pnand %p1778_p2, %p230_p3  ;;  %s2450_s14 = smov [#allocation6]  }
   0x9   : > { %s2917_s10 = scalar_select %p2539_p5, 1, 0 }
   0xa   : > { %s2918_s11 = scalar_select %p2543_p6, 1, 0 }
   0xb   : > { %p2169_p7 = pneg %p2543_p6  ;;  %s254_s15 = sshll.u32 %s2450_s14, 4  ;;  %s2555_s15 = int_to_ptr.vmem [resolvable:$true] %s254_s15 }
   0xc   : > { %s2558_s17 = sadd.s32 1, %s2447_s30   ;;  %s2289_s21 = scalar_lea.hbm %s2905_s0, 128 }
   0xd   : > { %p2551_p8 = pnand %p2169_p7, %p2914_p1  ;;  %s119_s18 = ssub.s32 %s2447_s30, %s2558_s17 }
   0xe   : > { %p2290_p9 = scmp.ne.s32.totalorder %s2905_s0, %s2289_s21  ;;  %p2296_p13 = scmp.lt.u32.totalorder %s2289_s21, %s2905_s0 }
   0xf   : > { %p2291_p10 = pneg %p2551_p8 }
  0x11   : > { %p2292_p11 = pnand %p2291_p10, %p2290_p9 }
  0x13   : > { %p2293_p12 = pneg %p2292_p11 }
  0x15   : > { %p2298_p0 = pnand %p2296_p13, %p2293_p12 }
  0x17   : > { %2301 = shalt.err (!%p2298_p0)
}
  0x18   : > { %s2302_s26 = scalar_lea.vmem %s244_s13, 128  ;;  %p2310_p4 = scmp.lt.s32.totalorder %s244_s13, %s244_s13 }
  0x19   : > { %p2303_p2 = scmp.ne.s32.totalorder %s244_s13, %s2302_s26  ;;  %p2311_p1 = scmp.lt.s32.totalorder %s2302_s26, %s2302_s26 }
  0x1b   : > { %p2305_p3 = pnand %p2303_p2, %p2291_p10  ;;  %p2312_p5 = por %p2311_p1, %p2310_p4 }
  0x1d   : > { %p2306_p7 = pneg %p2305_p3 }
  0x1f   : > { %p2313_p6 = pnand %p2312_p5, %p2306_p7 }
  0x21   : > { %2316 = shalt.err (!%p2313_p6)
}
  0x22   : > { %2172 = dma.hbm_to_vmem [thread:$0]  (!%p2551_p8), %s2905_s0, 128, %s244_s13, [#allocation4]  }
  0x23   : > { %s2317_s20 = scalar_lea.hbm %s2906_s1, 128 }
  0x24   : > { %p2318_p9 = scmp.ne.s32.totalorder %s2906_s1, %s2317_s20  ;;  %p2324_p5 = scmp.lt.u32.totalorder %s2317_s20, %s2906_s1 }
  0x26   : > { %p2320_p1 = pnand %p2318_p9, %p2291_p10 }
  0x28   : > { %p2321_p4 = pneg %p2320_p1 }
  0x2a   : > { %p2326_p6 = pnand %p2324_p5, %p2321_p4 }
  0x2c   : > { %2329 = shalt.err (!%p2326_p6)
}
  0x2d   : > { %s2330_s13 = scalar_lea.vmem %s2555_s15, 128  ;;  %p2338_p0 = scmp.lt.s32.totalorder %s2555_s15, %s2555_s15 }
  0x2e   : > { %p2331_p11 = scmp.ne.s32.totalorder %s2555_s15, %s2330_s13  ;;  %p2339_p2 = scmp.lt.s32.totalorder %s2330_s13, %s2330_s13 }
  0x30   : > { %p2333_p12 = pnand %p2331_p11, %p2291_p10  ;;  %p2340_p3 = por %p2339_p2, %p2338_p0 }
  0x32   : > { %p2334_p13 = pneg %p2333_p12 }
  0x34   : > { %p2341_p7 = pnand %p2340_p3, %p2334_p13 }
  0x36   : > { %2344 = shalt.err (!%p2341_p7)
}
  0x37   : > { %2175 = dma.hbm_to_vmem [thread:$0]  (!%p2551_p8), %s2906_s1, 128, %s2555_s15, [#allocation7]  }
  0x38   : > { %p120_p10 = scmp.eq.s32.totalorder %s119_s18, 0  ;;  %s122_s27 = sadd.s32 1, %s2443_s29 }
  0x39   : > { %p129_p9 = scmp.ne.s32.totalorder %s2443_s29, %s2439_s28  ;;  %p130_p1 = scmp.eq.s32.totalorder %s2447_s30, 0 }
  0x3a   : > { %s2617_s16 = scalar_select %p120_p10, %s2443_s29, %s122_s27  }
  0x3b   : > { %p131_p4 = por %p130_p1, %p129_p9  ;;  %p2182_p5 = scmp.lt.s32.totalorder %s2447_s30, 2 }
  0x3c   : > { %s290_s12 = sand.u32 1, %s2447_s30   ;;  %s292_s14 = sand.u32 1, %s2443_s29  }
  0x3d   : > { %s1782_s19 = sshll.u32 %s292_s14, 4  ;;  %s1818_s20 = sshll.u32 %s2447_s30, 8 }
  0x3e   : > { %s2626_s23 = scalar_lea.hbm %s2909_s4, %s1818_s20  ;;  %s294_s15 = scalar_lea.vmem [#allocation8], %s1782_s19 }
  0x3f   : > { %s302_s18 = sshll.u32 %s294_s15, 4  ;;  %p2630_p8 = pnand %p2182_p5, %p131_p4  ;;  %s2628_s18 = int_to_ptr.vmem [resolvable:$true] %s302_s18 }
  0x40   : > { %s291_s30 = scalar_lea.sflag [#allocation4], %s290_s12  ;;  %s2345_s13 = scalar_lea.hbm %s2626_s23, 256 }
  0x41   : > { %p2346_p6 = scmp.ne.s32.totalorder %s2626_s23, %s2345_s13  ;;  %p2347_p11 = pneg %p2630_p8 }
  0x42   : > { %s2350_s27 = scalar_lea.hbm %s2909_s4, 512  ;;  %p2351_p0 = scmp.lt.u32.totalorder %s2626_s23, %s2909_s4 }
  0x43   : > { %p2348_p12 = pnand %p2347_p11, %p2346_p6  ;;  %p2352_p2 = scmp.lt.u32.totalorder %s2350_s27, %s2345_s13 }
  0x44   : > { %p2354_p7 = scmp.lt.u32.totalorder %s2345_s13, %s2626_s23 }
  0x45   : > { %p2349_p13 = pneg %p2348_p12  ;;  %p2353_p3 = por %p2352_p2, %p2351_p0 }
  0x47   : > { %p2355_p10 = por %p2354_p7, %p2353_p3 }
  0x49   : > { %p2356_p9 = pnand %p2355_p10, %p2349_p13 }
  0x4b   : > { %2359 = shalt.err (!%p2356_p9)
}
  0x4c   : > { %s2360_s12 = scalar_lea.vmem %s2628_s18, 256  ;;  %s2451_s20 = smov [#allocation8]  }
  0x4d   : > { %p2361_p1 = scmp.ne.s32.totalorder %s2628_s18, %s2360_s12  ;;  %s2365_s21 = sshll.u32 %s2451_s20, 4  ;;  %s2366_s21 = int_to_ptr.vmem [resolvable:$false] %s2365_s21 }
  0x4e   : > { %s2367_s22 = scalar_lea.vmem %s2366_s21, 512  ;;  %p2368_p6 = scmp.lt.s32.totalorder %s2628_s18, %s2366_s21 }
  0x4f   : > { %p2363_p4 = pnand %p2361_p1, %p2347_p11  ;;  %p2369_p12 = scmp.lt.s32.totalorder %s2367_s22, %s2360_s12 }
  0x51   : > { %p2364_p5 = pneg %p2363_p4  ;;  %p2370_p0 = por %p2369_p12, %p2368_p6 }
  0x53   : > { %p2371_p2 = pnand %p2370_p0, %p2364_p5 }
  0x55   : > { %2374 = shalt.err (!%p2371_p2)
}
  0x56   : > { %2179 = dma.hbm_to_vmem [thread:$0]  (!%p2630_p8), %s2626_s23, 256, %s2628_s18, %s291_s30  }
  0x57   : > { %p2921_p13 = scmp.ne.s32.totalorder %s2918_s11, 0 }
  0x58   : > { %p2922_p11 = scmp.eq.s32.totalorder (!%p2921_p13), %s2530_s9, 0 }
  0x59   : > { %311 = sbr.rel (%p2921_p13) target bundleno = 3706 (0xe7a), region = 52 }
  0x60   : > { %2418 = dma.done.wait (%p2922_p11), [#allocation4], 128   ;;  %p2923_p3 = pmov %p2922_p11 }
  0x62   : > { %2420 = vsyncadd (%p2923_p3), [#allocation4], 4294967168  ;;  %p2924_p7 = pmov %p2923_p3 }
  0x63   : > { %p2925_p10 = pmov %p2923_p3 }
  0x64   : > { %2422 = dma.done.wait (%p2924_p7), [#allocation7], 128  }
  0x65   : > { %2424 = vsyncadd (%p2925_p10), [#allocation7], 4294967168  ;;  %s321_s15 = sand.u32 1, %s2530_s9   ;;  %s323_s23 = sand.u32 1, %s2439_s28  }
  0x66   : > { %s1788_s18 = sshll.u32 %s323_s23, 4  ;;  %s322_s11 = scalar_lea.sflag [#allocation4], %s321_s15 }
  0x67   : > { %s2671_s24 = scalar_lea.vmem [#allocation8], %s1788_s18  ;;  %p2926_p8 = scmp.ne.s32.totalorder %s2917_s10, 0 }
  0x69   : > { %2426 = dma.done.wait (%p2926_p8), %s322_s11, 256  }
  0x6a   : > { %2428 = vsyncadd (%p2926_p8), %s322_s11, 4294967040  ;;  %p363_p9 = scmp.lt.s32.totalorder %s2530_s9, 1  ;;  %p2927_p1 = scmp.ne.s32.totalorder %s2530_s9, 0 }
  0x6b   : > { %v377_v0 = vld [vmem:[#allocation3] sm:$0xff] (!%p2927_p1)  ;;  %vm378_vm0 = vcmask (!%p2927_p1), 523264  }
  0x6c   : > { %s364_s30 = scalar_select %p363_p9, %s2530_s9, 1 }
  0x6d   : > { %376 = sbr.rel (%p2927_p1) target bundleno = 116 (0x74), region = 68  ;;  %379 = vst.msk [vmem:[#allocation2] sm:$0xff] (!%p2927_p1), %vm378_vm0, %v377_v0 }
  0x6e   : > { %s2154_s13 = smul.u32 160, %s364_s30  ;;  %s1819_s25 = sshll.u32 %s364_s30, 7 }
  0x6f   : > { %s2682_s14 = scalar_lea.vmem %s2908_s3, %s1819_s25 }
  0x70   : > { %s2687_s20 = scalar_lea.vmem %s2907_s2, %s2154_s13 }
  0x74 PF: > { %v2691_v1 = vld [vmem:[#allocation2] sm:$0xff]  ;;  %vm383_vm1 = vcmask 523264   ;;  %v2240_v11 = vld [vmem:[%s2687_s20 + $0x28] ss:$20 sps:$4 sm:$0xff]   ;;  %v2452_v13 = vmov 0.0   ;;  %v427_v26 = vlaneseq  ;;  %vm2453_vm2 = vmmov 0  }
  0x75   : > { %v384_v2 = vsel %vm383_vm1, %v2691_v1, 0.0  ;;  %v2235_v8 = vld [vmem:[%s2687_s20 + $0x4] ss:$20 sps:$4 sm:$0xff]   ;;  %v2237_v9 = vld [vmem:[%s2687_s20] ss:$20 sps:$4 sm:$0xff]   ;;  %504 = vmatprep.mubr.f32.mxu1 %v2452_v13  ;;  %1988 = vmatprep.subr.mxu0 %v2452_v13  ;;  %s2454_s10 = smov 48  }
  0x76   : > { %385 = vadd.xlane.f32.xlu0 %v384_v2  ;;  %v2238_v10 = vld [vmem:[%s2687_s20 + $0x2c] ss:$20 sps:$4 sm:$0xff]   ;;  %2047 = vmatprep.subr.bf16.mxu1 %v2235_v8  ;;  %v2241_v12 = vld [vmem:[%s2687_s20 + $0x54] ss:$20 sps:$4 sm:$0xff]   ;;  %v2243_v14 = vld [vmem:[%s2687_s20 + $0x50] ss:$20 sps:$4 sm:$0xff]  }
  0x77   : > { %2049 = vmatpush1.bf16.msra.mxu1 %v2237_v9  ;;  %v2244_v15 = vld [vmem:[%s2687_s20 + $0x7c] ss:$20 sps:$4 sm:$0xff]   ;;  %v2246_v16 = vld [vmem:[%s2687_s20 + $0x78] ss:$20 sps:$4 sm:$0xff]   ;;  %v2711_v27 = vshrl.u32 %v427_v26, 7  ;;  %1990 = vmatprep.mubr.msk.f32.mxu0 %vm2453_vm2, %v2452_v13  ;;  %s2455_s21 = smov 64  }
  0x78   : > { %2051 = vmatprep.subr.bf16.mxu1 %v2238_v10  ;;  %v381_v21 = vld [vmem:[%s2671_s24] ss:$0 sm:$0xff]  ;;  %v382_v23 = vld [vmem:[%s2671_s24 + $0x1] ss:$0 sm:$0xff]  ;;  %s2456_s22 = smov 112   ;;  %vm515_vm3 = vcmask 130048  }
  0x79   : > { %v429_v28 = vsub.s32 0, %v2711_v27  ;;  %v1793_v29 = vld [vmem:[%s2671_s24 + $0x2] ss:$8 sm:$0x3]  ;;  %v433_v34 = vsub.s32 1, %v2711_v27  ;;  %vm590_vm4 = vcmask 64512  }
  0x7a   : > { %v511_v38 = vld [vmem:[#allocation6] sm:$0xff]  ;;  %s2457_s15 = smov 96   ;;  %s2458_s23 = smov 32   ;;  %vm1184_vm5 = vcmask 261120   ;;  %vm1186_vm6 = vcmask 392192  }
  0x7b   : > { %2053 = vmatpush1.bf16.msra.mxu1 %v2240_v11  ;;  %v430_v30 = vrot.slane %v1793_v29, %v429_v28  ;;  %v434_v35 = vrot.slane %v1793_v29, %v433_v34  ;;  %s2459_s18 = smov 16   ;;  %s2460_s11 = smov 80  }
  0x7c   : > { %2055 = vmatprep.subr.bf16.mxu1 %v2241_v12  ;;  %p1810_p4 = scmp.ne.s32.totalorder %s2530_s9, 1 }
  0x7d   : > { %vm2463_vm7 = vmmov (!%p1810_p4), 0  }
  0x7f   : > { %2057 = vmatpush1.bf16.msra.mxu1 %v2243_v14 }
  0x80   : > { %2059 = vmatprep.subr.bf16.mxu1 %v2244_v15 }
  0x83   : > { %2061 = vmatpush1.bf16.msra.mxu1 %v2246_v16 }
  0x84   : > { %1968 = vmatprep.subr.mxu1 %v2452_v13 }
 0x103   : > { %v386_v3 = vpop.xlane.xlu0 %385 }
 0x104   : > { %v388_v4 = vmul.f32 0.015625, %v386_v3 }
 0x106   : > { %v389_v5 = vsub.f32 %v2691_v1, %v388_v4 }
 0x108   : > { %v390_v6 = vmul.f32 %v389_v5, %v389_v5 }
 0x10a   : > { %v391_v7 = vsel %vm383_vm1, %v390_v6, 0.0 }
 0x10b   : > { %392 = vadd.xlane.f32.xlu0 %v391_v7 }
 0x198   : > { %v393_v17 = vpop.xlane.xlu0 %392 }
 0x199   : > { %v394_v18 = vmul.f32 0.015625, %v393_v17 }
 0x19b   : > { %v395_v19 = vadd.f32 1e-05, %v394_v18 }
 0x19d   : > { %2263 = vrsqrt.f32 %v395_v19 }
 0x1a7   : > { %v2264_v20 = vpop.eup %2263 }
 0x1a8   : > { %v397_v22 = vmul.f32 %v2264_v20, %v389_v5 }
 0x1aa   : > { %v398_v24 = vmul.f32 %v397_v22, %v381_v21 }
 0x1ac   : > { %v399_v25 = vadd.f32 %v398_v24, %v382_v23 }
 0x1ae   : > { %1794 = vmatmul.mubr.msk.f32.vlgmr.msra.gmra.mrb[0].mxu1 %vm383_vm1, %v399_v25 }
 0x1af   : > { %1970 = vmatprep.mubr.msk.f32.mxu1 %vm2453_vm2, %v2452_v13 }
 0x281   : > { %v506_v31 = vpop.f32.mrb[0].mxu1 }
 0x282   : > { %v507_v32 = vadd.f32 %v506_v31, %v430_v30  ;;  %v508_v33 = vpop.f32.mrb[1].mxu1 }
 0x283   : > { %v2728_v37 = vadd.f32 %v508_v33, %v434_v35 }
 0x284   : > { %677 = vrot.lane.b32.xlu0 %v507_v32, %s2454_s10  ;;  %513 = vrot.lane.b32.xlu1 %v507_v32, %s2455_s21 }
 0x288   : > { %675 = vrot.lane.b32.xlu0 %v507_v32, %s2456_s22 }
 0x2f6   : > { %v514_v36 = vpop.permute.xlu1 %513  ;;  %v678_v48 = vpop.permute.xlu0 %677 }
 0x2f7   : > { %1969 = vmatpush3.xpose.msk.msra.mxu1 %vm515_vm3, %v514_v36 }
 0x2f8   : > { %1973 = vmatprep.subr.mxu1 %v2452_v13 }
 0x2fa   : > { %1971 = vmatmul.mubr.msk.f32.vlgmr.msra.gmra.mrb[2].mxu1 %vm515_vm3, %v507_v32  ;;  %v676_v49 = vpop.permute.xlu0 %675 }
 0x2fb   : > { %1974 = vmatpush3.msra.mxu1 %v2728_v37  ;;  %1975 = vmatprep.mubr.msk.f32.mxu1 %vm2453_vm2, %v2452_v13 }
 0x2fc   : > { %1978 = vmatprep.subr.mxu1 %v2452_v13 }
 0x3cd   : > { %v586_v39 = vpop.f32.mrb[2].mxu1 }
 0x3ce   : > { %v587_v40 = vadd.f32 %v586_v39, %v511_v38  ;;  %v1972_v41 = vpop.f32.mrb[3].mxu1  ;;  %v2247_v39 = vld [vmem:[%s2687_s20 + $0x10] ss:$20 sps:$4 sm:$0xff]  }
 0x3cf   : > { %v2248_v41 = vld [vmem:[%s2687_s20 + $0x38] ss:$20 sps:$4 sm:$0xff]  }
 0x3d0   : > { %v591_v42 = vsel %vm590_vm4, %v587_v40, -inf }
 0x3d1   : > { %592 = vmax.xlane.f32.xlu1 %v591_v42  ;;  %v2249_v42 = vld [vmem:[%s2687_s20 + $0x60] ss:$20 sps:$4 sm:$0xff]  }
 0x3e2   : > { %841 = vrot.lane.b32.xlu1 %v507_v32, %s2457_s15 }
 0x45e   : > { %v593_v43 = vpop.xlane.xlu1 %592 }
 0x45f   : > { %v594_v44 = vsub.f32 %v587_v40, %v593_v43  ;;  %v2461_v40 = vmov 0.0|0.0   ;;  %v2250_v43 = vld [vmem:[%s2687_s20 + $0x88] ss:$20 sps:$4 sm:$0xff]  }
 0x461   : > { %v595_v45 = vmul.f32 1.442695, %v594_v44 }
 0x462   : > { %v842_v52 = vpop.permute.xlu1 %841 }
 0x463   : > { %2265 = vpow2.f32 %v595_v45 }
 0x46d   : > { %v2266_v46 = vpop.eup %2265 }
 0x46e   : > { %v597_v47 = vsel %vm590_vm4, %v2266_v46, 0.0 }
 0x46f   : > { %598 = vadd.xlane.f32.xlu0 %v597_v47 }
 0x485   : > { %843 = vrot.lane.b32.xlu0 %v507_v32, %s2458_s23 }
 0x489   : > { %1008 = vrot.lane.b32.xlu0 %v507_v32, %s2459_s18 }
 0x48d   : > { %1006 = vrot.lane.b32.xlu0 %v507_v32, %s2460_s11 }
 0x4fc   : > { %v599_v50 = vpop.xlane.xlu0 %598 }
 0x4fd   : > { %2267 = vrcp.f32 %v599_v50 }
 0x500   : > { %v844_v51 = vpop.permute.xlu0 %843 }
 0x501   : > { %1989 = vmatpush3.xpose.msk.msra.mxu0 %vm515_vm3, %v844_v51 }
 0x502   : > { %1998 = vmatprep.subr.mxu0 %v2452_v13 }
 0x504   : > { %v1009_v53 = vpop.permute.xlu0 %1008  ;;  %1991 = vmatmul.mubr.msk.f32.vlgmr.msra.gmra.mrb[0].mxu0 %vm515_vm3, %v842_v52 }
 0x505   : > { %1999 = vmatpush3.xpose.msk.msra.mxu0 %vm515_vm3, %v1009_v53  ;;  %2000 = vmatprep.mubr.msk.f32.mxu0 %vm2453_vm2, %v2452_v13 }
 0x506   : > { %2062 = vmatprep.subr.bf16.mxu0 %v2461_v40 }
 0x507   : > { %v2268_v54 = vpop.eup %2267 }
 0x508   : > { %v601_v55 = vmul.f32 %v2268_v54, %v2266_v46  ;;  %v1007_v56 = vpop.permute.xlu0 %1006 }
 0x509   : > { %2001 = vmatmul.mubr.msk.f32.vlgmr.msra.gmra.mrb[2].mxu0 %vm515_vm3, %v1007_v56 }
 0x50a   : > { %1976 = vmatmul.mubr.msk.f32.vlgmr.msra.gmra.mrb[4].mxu1 %vm590_vm4, %v601_v55  ;;  %2024 = vmatprep.mubr.msk.f32.mxu0 %vm2453_vm2, %v2452_v13  ;;  %v1204_v55 = vld [vmem:[%s2671_s24 + $0x3] ss:$0 sm:$0xff] }
 0x50b   : > { %1979 = vmatpush3.xpose.msk.msra.mxu1 %vm515_vm3, %v678_v48  ;;  %1980 = vmatprep.mubr.msk.f32.mxu1 %vm2453_vm2, %v2452_v13 }
 0x50c   : > { %1983 = vmatprep.subr.mxu1 %v2452_v13  ;;  %2064 = vmatpush3.bf16.msra.mxu0 %v2247_v39  ;;  %v1808_v39 = vld [vmem:[%s2671_s24 + $0x6] ss:$8 sm:$0x3] }
 0x50d   : > { %2065 = vmatprep.subr.bf16.mxu0 %v2461_v40 }
 0x50e   : > { %1981 = vmatmul.mubr.msk.f32.vlgmr.msra.gmra.mrb[6].mxu1 %vm515_vm3, %v676_v49 }
 0x50f   : > { %1985 = vmatprep.mubr.msk.f32.mxu1 %vm2453_vm2, %v2452_v13 }
 0x510   : > { %2067 = vmatpush3.bf16.msra.mxu0 %v2248_v41  ;;  %v1330_v41 = vrot.slane %v1808_v39, %v433_v34 }
 0x511   : > { %2068 = vmatprep.subr.bf16.mxu0 %v2461_v40 }
 0x514   : > { %2070 = vmatpush3.bf16.msra.mxu0 %v2249_v42 }
 0x515   : > { %2071 = vmatprep.subr.bf16.mxu0 %v2461_v40  ;;  %v1326_v40 = vrot.slane %v1808_v39, %v429_v28 }
 0x518   : > { %2073 = vmatpush3.bf16.msra.mxu0 %v2250_v43 }
 0x5d7   : > { %v915_v57 = vpop.f32.mrb[0].mxu0 }
 0x5d8   : > { %v916_v58 = vadd.f32 %v915_v57, %v511_v38  ;;  %v1992_v59 = vpop.f32.mrb[1].mxu0 }
 0x5da   : > { %v919_v60 = vsel %vm590_vm4, %v916_v58, -inf }
 0x5db   : > { %920 = vmax.xlane.f32.xlu1 %v919_v60 }
 0x5dc   : > { %v1080_v61 = vpop.f32.mrb[2].mxu0 }
 0x5dd   : > { %v2759_v62 = vpop.f32.mrb[4].mxu1  ;;  %v2002_v63 = vpop.f32.mrb[3].mxu0  ;;  %v1081_v5 = vadd.f32 %v1080_v61, %v511_v38 }
 0x5de   : > { %v1977_v0 = vpop.f32.mrb[5].mxu1 }
 0x5df   : > { %v1084_v7 = vsel %vm590_vm4, %v1081_v5, -inf }
 0x5e1   : > { %v749_v2 = vpop.f32.mrb[6].mxu1 }
 0x5e2   : > { %v750_v3 = vadd.f32 %v749_v2, %v511_v38  ;;  %v1982_v4 = vpop.f32.mrb[7].mxu1 }
 0x5e3   : > { %v2254_v4 = vld [vmem:[%s2687_s20 + $0x34] ss:$20 sps:$4 sm:$0xff]  }
 0x5e4   : > { %v753_v6 = vsel %vm590_vm4, %v750_v3, -inf }
 0x5e5   : > { %754 = vmax.xlane.f32.xlu0 %v753_v6  ;;  %v2257_v6 = vld [vmem:[%s2687_s20 + $0x5c] ss:$20 sps:$4 sm:$0xff]  }
 0x5e9   : > { %1085 = vmax.xlane.f32.xlu0 %v1084_v7  ;;  %v2259_v7 = vld [vmem:[%s2687_s20 + $0x58] ss:$20 sps:$4 sm:$0xff]  }
 0x5ec   : > { %765 = vrot.lane.b32.xlu1 %v2728_v37, %s2456_s22 }
 0x5f0   : > { %1095 = vrot.lane.b32.xlu1 %v2728_v37, %s2460_s11 }
 0x668   : > { %v921_v8 = vpop.xlane.xlu1 %920 }
 0x669   : > { %v922_v9 = vsub.f32 %v916_v58, %v921_v8  ;;  %v2260_v8 = vld [vmem:[%s2687_s20 + $0x84] ss:$20 sps:$4 sm:$0xff]  }
 0x66b   : > { %v923_v10 = vmul.f32 1.442695, %v922_v9  ;;  %v2262_v9 = vld [vmem:[%s2687_s20 + $0x80] ss:$20 sps:$4 sm:$0xff]  }
 0x66c   : > { %v766_v11 = vpop.permute.xlu1 %765 }
 0x66d   : > { %2269 = vpow2.f32 %v923_v10  ;;  %1984 = vmatpush3.msra.mxu1 %v766_v11  ;;  %v1891_v10 = vld [vmem:[%s2682_s14 + $0x40] sm:$0xff]  }
 0x66e   : > { %1993 = vmatprep.subr.mxu1 %v2452_v13  ;;  %v1821_v11 = vld [vmem:[%s2682_s14] sm:$0xff]   ;;  %2091 = vmatprep.subr.bf16.mxu0 %v1891_v10 }
 0x672   : > { %v755_v12 = vpop.xlane.xlu0 %754 }
 0x673   : > { %v756_v14 = vsub.f32 %v750_v3, %v755_v12  ;;  %v2251_v3 = vld [vmem:[%s2687_s20 + $0xc] ss:$20 sps:$4 sm:$0xff]  }
 0x675   : > { %v757_v19 = vmul.f32 1.442695, %v756_v14 }
 0x676   : > { %v1086_v15 = vpop.xlane.xlu0 %1085 }
 0x677   : > { %v2270_v16 = vpop.eup %2269  ;;  %v1087_v17 = vsub.f32 %v1081_v5, %v1086_v15  ;;  %v2256_v5 = vld [vmem:[%s2687_s20 + $0x30] ss:$20 sps:$4 sm:$0xff]  }
 0x678   : > { %v925_v18 = vsel %vm590_vm4, %v2270_v16, 0.0 }
 0x679   : > { %v1088_v20 = vmul.f32 1.442695, %v1087_v17  ;;  %926 = vadd.xlane.f32.xlu0 %v925_v18  ;;  %v1279_v17 = vld [vmem:[%s2671_s24 + $0x4] ss:$0 sm:$0xff] }
 0x67b   : > { %2271 = vpow2.f32 %v1088_v20 }
 0x67c   : > { %2273 = vpow2.f32 %v757_v19  ;;  %v1280_v19 = vld [vmem:[%s2671_s24 + $0x5] ss:$0 sm:$0xff] }
 0x685   : > { %v2272_v21 = vpop.eup %2271 }
 0x686   : > { %v1090_v22 = vsel %vm590_vm4, %v2272_v21, 0.0  ;;  %v2274_v23 = vpop.eup %2273 }
 0x687   : > { %1091 = vadd.xlane.f32.xlu0 %v1090_v22  ;;  %v759_v24 = vsel %vm590_vm4, %v2274_v23, 0.0  ;;  %v1892_v22 = vld [vmem:[%s2682_s14 + $0x48] sm:$0xff]  }
 0x68b   : > { %760 = vadd.xlane.f32.xlu0 %v759_v24  ;;  %v1893_v24 = vld [vmem:[%s2682_s14 + $0x50] sm:$0xff]  }
 0x6a1   : > { %930 = vrot.lane.b32.xlu0 %v2728_v37, %s2457_s15  ;;  %v1096_v37 = vpop.permute.xlu1 %1095 }
 0x706   : > { %v927_v25 = vpop.xlane.xlu0 %926 }
 0x714   : > { %v1092_v26 = vpop.xlane.xlu0 %1091 }
 0x718   : > { %v761_v29 = vpop.xlane.xlu0 %760 }
 0x719   : > { %2275 = vrcp.f32 %v761_v29  ;;  %v1886_v29 = vld [vmem:[%s2682_s14 + $0x18] sm:$0xff]  }
 0x71a   : > { %2277 = vrcp.f32 %v927_v25  ;;  %v1885_v25 = vld [vmem:[%s2682_s14 + $0x10] sm:$0xff]  }
 0x71b   : > { %2279 = vrcp.f32 %v1092_v26  ;;  %v1894_v26 = vld [vmem:[%s2682_s14 + $0x58] sm:$0xff]  }
 0x71c   : > { %v931_v33 = vpop.permute.xlu0 %930 }
 0x723   : > { %v2276_v30 = vpop.eup %2275 }
 0x724   : > { %v763_v31 = vmul.f32 %v2276_v30, %v2274_v23  ;;  %v2278_v32 = vpop.eup %2277  ;;  %v1884_v23 = vld [vmem:[%s2682_s14 + $0x8] sm:$0xff]   ;;  %v1895_v30 = vld [vmem:[%s2682_s14 + $0x60] sm:$0xff]  }
 0x725   : > { %v929_v35 = vmul.f32 %v2278_v32, %v2270_v16  ;;  %v2280_v36 = vpop.eup %2279  ;;  %v1896_v32 = vld [vmem:[%s2682_s14 + $0x68] sm:$0xff]  }
 0x726   : > { %1986 = vmatmul.mubr.msk.f32.vlgmr.msra.gmra.mrb[8].mxu1 %vm590_vm4, %v763_v31  ;;  %v1094_v38 = vmul.f32 %v2280_v36, %v2272_v21  ;;  %v1887_v31 = vld [vmem:[%s2682_s14 + $0x20] sm:$0xff]   ;;  %v1889_v36 = vld [vmem:[%s2682_s14 + $0x30] sm:$0xff]  }
 0x727   : > { %1994 = vmatpush3.msra.mxu1 %v931_v33  ;;  %1995 = vmatprep.mubr.msk.f32.mxu1 %vm2453_vm2, %v2452_v13  ;;  %v1888_v33 = vld [vmem:[%s2682_s14 + $0x28] sm:$0xff]  }
 0x728   : > { %2003 = vmatprep.subr.mxu1 %v2452_v13 }
 0x72a   : > { %1996 = vmatmul.mubr.msk.f32.vlgmr.msra.gmra.mrb[10].mxu1 %vm590_vm4, %v929_v35  ;;  %v1897_v35 = vld [vmem:[%s2682_s14 + $0x70] sm:$0xff]  }
 0x72b   : > { %2004 = vmatpush3.msra.mxu1 %v1096_v37  ;;  %2005 = vmatprep.mubr.msk.f32.mxu1 %vm2453_vm2, %v2452_v13  ;;  %v1898_v37 = vld [vmem:[%s2682_s14 + $0x78] sm:$0xff]  }
 0x72c   : > { %2075 = vmatprep.subr.bf16.mxu1 %v2251_v3 }
 0x72e   : > { %2006 = vmatmul.mubr.msk.f32.vlgmr.msra.gmra.mrb[12].mxu1 %vm590_vm4, %v1094_v38  ;;  %v1890_v38 = vld [vmem:[%s2682_s14 + $0x38] sm:$0xff]  }
 0x72f   : > { %1400 = vmatprep.mubr.f32.mxu1 %v2452_v13 }
 0x7f9   : > { %v837_v44 = vpop.f32.mrb[8].mxu1 }
 0x7fa   : > { %1172 = vrot.lane.b32.xlu1 %v837_v44, %s2459_s18  ;;  %v1987_v45 = vpop.f32.mrb[9].mxu1 }
 0x7fd   : > { %v1002_v46 = vpop.f32.mrb[10].mxu1 }
 0x7fe   : > { %1176 = vrot.lane.b32.xlu1 %v1002_v46, %s2458_s23  ;;  %v1997_v13 = vpop.f32.mrb[11].mxu1 }
 0x801   : > { %v1167_v47 = vpop.f32.mrb[12].mxu1 }
 0x802   : > { %1180 = vrot.lane.b32.xlu0 %v1167_v47, %s2454_s10  ;;  %v2007_v48 = vpop.f32.mrb[13].mxu1 }
 0x86c   : > { %v1173_v49 = vpop.permute.xlu1 %1172 }
 0x86d   : > { %v1183_v51 = vsel %vm515_vm3, %v2759_v62, %v1173_v49 }
 0x870   : > { %v1177_v50 = vpop.permute.xlu1 %1176 }
 0x871   : > { %v1185_v52 = vsel %vm1184_vm5, %v1183_v51, %v1177_v50 }
 0x874   : > { %v1181_v53 = vpop.permute.xlu0 %1180 }
 0x875   : > { %v1187_v54 = vsel %vm1186_vm6, %v1185_v52, %v1181_v53 }
 0x876   : > { %2025 = vmatmul.mubr.msk.f32.vlgmr.msra.gmra.mrb[4].mxu0 %vm383_vm1, %v1187_v54 }
 0x877   : > { %2093 = vmatpush3.bf16.msra.mxu0 %v1821_v11  ;;  %v1597_v11 = vld [vmem:[%s2912_s7 + $0x10] sm:$0xff] (!%p1810_p4) }
 0x878   : > { %2095 = vmatprep.subr.bf16.mxu0 %v1892_v22 }
 0x87b   : > { %2097 = vmatpush3.bf16.msra.mxu0 %v1884_v23 }
 0x87c   : > { %2099 = vmatprep.subr.bf16.mxu0 %v1893_v24 }
 0x87f   : > { %2101 = vmatpush3.bf16.msra.mxu0 %v1885_v25 }
 0x880   : > { %2103 = vmatprep.subr.bf16.mxu0 %v1894_v26 }
 0x883   : > { %2105 = vmatpush3.bf16.msra.mxu0 %v1886_v29  ;;  %v1811_v29 = vld [vmem:[%s2910_s5] ss:$0 sm:$0xff] (!%p1810_p4) }
 0x884   : > { %2107 = vmatprep.subr.bf16.mxu0 %v1895_v30 }
 0x887   : > { %2109 = vmatpush3.bf16.msra.mxu0 %v1887_v31  ;;  %v1812_v31 = vld [vmem:[%s2911_s6] ss:$0 sm:$0xff] (!%p1810_p4) }
 0x888   : > { %2111 = vmatprep.subr.bf16.mxu0 %v1896_v32 }
 0x88b   : > { %2113 = vmatpush3.bf16.msra.mxu0 %v1888_v33 }
 0x88c   : > { %2115 = vmatprep.subr.bf16.mxu0 %v1897_v35 }
 0x88f   : > { %2117 = vmatpush3.bf16.msra.mxu0 %v1889_v36 }
 0x890   : > { %2119 = vmatprep.subr.bf16.mxu0 %v1898_v37 }
 0x893   : > { %2121 = vmatpush3.bf16.msra.mxu0 %v1890_v38 }
 0x949   : > { %v1274_v56 = vpop.f32.mrb[4].mxu0 }
 0x94a   : > { %v1275_v57 = vadd.f32 %v1274_v56, %v1204_v55  ;;  %v2026_v58 = vpop.f32.mrb[5].mxu0 }
 0x94c   : > { %v2794_v59 = vadd.f32 %v1275_v57, %v2691_v1  ;;  %v2253_v1 = vld [vmem:[%s2687_s20 + $0x8] ss:$20 sps:$4 sm:$0xff]  }
 0x94d   : > { %2077 = vmatpush1.bf16.msra.mxu1 %v2253_v1 }
 0x94e   : > { %v1281_v60 = vsel %vm383_vm1, %v2794_v59, 0.0  ;;  %2079 = vmatprep.subr.bf16.mxu1 %v2254_v4 }
 0x94f   : > { %1282 = vadd.xlane.f32.xlu1 %v1281_v60 }
 0x951   : > { %2081 = vmatpush1.bf16.msra.mxu1 %v2256_v5 }
 0x952   : > { %2083 = vmatprep.subr.bf16.mxu1 %v2257_v6 }
 0x955   : > { %2085 = vmatpush1.bf16.msra.mxu1 %v2259_v7 }
 0x956   : > { %2087 = vmatprep.subr.bf16.mxu1 %v2260_v8 }
 0x959   : > { %2089 = vmatpush1.bf16.msra.mxu1 %v2262_v9  ;;  %v1595_v9 = vld [vmem:[%s2912_s7] sm:$0xff] (!%p1810_p4) }
 0x9dc   : > { %v1283_v61 = vpop.xlane.xlu1 %1282 }
 0x9dd   : > { %v1284_v62 = vmul.f32 0.015625, %v1283_v61 }
 0x9df   : > { %v1285_v63 = vsub.f32 %v2794_v59, %v1284_v62  ;;  %v1489_v62 = vld [vmem:[%s2671_s24 + $0x7] ss:$0 sm:$0xff] }
 0x9e1   : > { %v1286_v0 = vmul.f32 %v1285_v63, %v1285_v63 }
 0x9e3   : > { %v1287_v2 = vsel %vm383_vm1, %v1286_v0, 0.0 }
 0x9e4   : > { %1288 = vadd.xlane.f32.xlu0 %v1287_v2 }
 0xa71   : > { %v1289_v12 = vpop.xlane.xlu0 %1288 }
 0xa72   : > { %v1290_v14 = vmul.f32 0.015625, %v1289_v12  ;;  %v1598_v12 = vld [vmem:[%s2912_s7 + $0x18] sm:$0xff] (!%p1810_p4) }
 0xa74   : > { %v1291_v15 = vadd.f32 1e-05, %v1290_v14  ;;  %v2462_v14 = vmov (!%p1810_p4), 0.0|0.0  }
 0xa75   : > { %2122 = vmatprep.subr.bf16.mxu0 (!%p1810_p4), %v2462_v14 }
 0xa76   : > { %2281 = vrsqrt.f32 %v1291_v15  ;;  %v2464_v15 = vmov (!%p1810_p4), 0.0  }
 0xa80   : > { %v2282_v16 = vpop.eup %2281 }
 0xa81   : > { %v1293_v18 = vmul.f32 %v2282_v16, %v1285_v63  ;;  %v2126_v16 = vpack.c.bf16 (!%p1810_p4), %v1598_v12, %v1597_v11 }
 0xa83   : > { %v1294_v20 = vmul.f32 %v1293_v18, %v1279_v17  ;;  %v1599_v17 = vld [vmem:[%s2912_s7 + $0x20] sm:$0xff] (!%p1810_p4)  ;;  %v1600_v18 = vld [vmem:[%s2912_s7 + $0x28] sm:$0xff] (!%p1810_p4) }
 0xa85   : > { %v1295_v21 = vadd.f32 %v1294_v20, %v1280_v19  ;;  %v2129_v19 = vpack.c.bf16 (!%p1810_p4), %v1600_v18, %v1599_v17  ;;  %v1601_v20 = vld [vmem:[%s2912_s7 + $0x30] sm:$0xff] (!%p1810_p4) }
 0xa87   : > { %1809 = vmatmul.mubr.msk.f32.vlgmr.msra.gmra.mrb[14].mxu1 %vm383_vm1, %v1295_v21  ;;  %v1602_v21 = vld [vmem:[%s2912_s7 + $0x38] sm:$0xff] (!%p1810_p4) }
 0xa88   : > { %v2132_v22 = vpack.c.bf16 (!%p1810_p4), %v1602_v21, %v1601_v20 }
 0xb5a   : > { %v1402_v42 = vpop.f32.mrb[14].mxu1 }
 0xb5b   : > { %v1403_v43 = vadd.f32 %v1402_v42, %v1326_v40  ;;  %v1404_v44 = vpop.f32.mrb[15].mxu1 }
 0xb5c   : > { %v1405_v45 = vadd.f32 %v1404_v44, %v1330_v41 }
 0xb5d   : > { %v1409_v46 = vmul.f32 0.044715, %v1403_v43  ;;  %v1407_v57 = vmul.f32 0.5, %v1403_v43 }
 0xb5e   : > { %v1410_v13 = vmul.f32 0.044715, %v1405_v45  ;;  %v1408_v55 = vmul.f32 0.5, %v1405_v45 }
 0xb5f   : > { %v1411_v47 = vmul.f32 %v1409_v46, %v1403_v43 }
 0xb60   : > { %v1412_v48 = vmul.f32 %v1410_v13, %v1405_v45 }
 0xb61   : > { %v1413_v49 = vmul.f32 %v1411_v47, %v1403_v43 }
 0xb62   : > { %v1414_v50 = vmul.f32 %v1412_v48, %v1405_v45 }
 0xb63   : > { %v1415_v51 = vadd.f32 %v1413_v49, %v1403_v43 }
 0xb64   : > { %v1416_v52 = vadd.f32 %v1414_v50, %v1405_v45 }
 0xb65   : > { %v1417_v53 = vmul.f32 0.7978846, %v1415_v51 }
 0xb66   : > { %v1418_v54 = vmul.f32 0.7978846, %v1416_v52 }
 0xb67   : > { %2283 = vtanh.f32 %v1417_v53 }
 0xb68   : > { %2285 = vtanh.f32 %v1418_v54 }
 0xb71   : > { %v2284_v28 = vpop.eup %2283 }
 0xb72   : > { %v2286_v27 = vpop.eup %2285  ;;  %v1421_v34 = vadd.f32 1.0, %v2284_v28 }
 0xb73   : > { %v1422_v56 = vadd.f32 1.0, %v2286_v27 }
 0xb74   : > { %v1423_v60 = vmul.f32 %v1421_v34, %v1407_v57 }
 0xb75   : > { %v1424_v58 = vmul.f32 %v1422_v56, %v1408_v55 }
 0xb77   : > { %1554 = vmatprep.mubr.f32.mxu0 %v1424_v58 }
 0xb78   : > { %1555 = vmatmul.mubr.f32.vlgmr.msra.gmra.mrb[6].mxu0 %v1423_v60 }
 0xb79   : > { %2043 = vmatprep.mubr.msk.f32.mxu0 (!%p1810_p4), %vm2463_vm7, %v2464_v15 }
 0xc4b   : > { %v1956_v61 = vpop.f32.mrb[6].mxu0 }
 0xc4c   : > { %v1957_v63 = vpop.f32.mrb[7].mxu0 }
 0xc4d   : > { %v1958_v0 = vadd.f32 %v1957_v63, %v1956_v61  ;;  %1565 = sbr.rel (%p1810_p4) target bundleno = 3681 (0xe61), region = 72 }
 0xc4f   : > { %v1557_v2 = vadd.f32 %v1958_v0, %v1489_v62 }
 0xc51   : > { %v1560_v3 = vadd.f32 %v1557_v2, %v2794_v59  ;;  %v1596_v59 = vld [vmem:[%s2912_s7 + $0x8] sm:$0xff] (!%p1810_p4) }
 0xc52   : > { %v2123_v10 = vpack.c.bf16 (!%p1810_p4), %v1596_v59, %v1595_v9 }
 0xc53   : > { %1561 = vst.msk [vmem:[#allocation2] sm:$0xff] %vm383_vm1, %v1560_v3  ;;  %v1568_v1 = vsel (!%p1810_p4), %vm383_vm1, %v1560_v3, 0.0 }
 0xc54   : > { %1569 = vadd.xlane.f32.xlu0 %v1568_v1  ;;  %2124 = vmatpush3.bf16.msra.mxu0 %v2123_v10 }
 0xc55   : > { %2125 = vmatprep.subr.bf16.mxu0 %v2462_v14 }
 0xc58   : > { %2127 = vmatpush3.bf16.msra.mxu0 %v2126_v16 }
 0xc59   : > { %2128 = vmatprep.subr.bf16.mxu0 %v2462_v14 }
 0xc5c   : > { %2130 = vmatpush3.bf16.msra.mxu0 %v2129_v19 }
 0xc5d   : > { %2131 = vmatprep.subr.bf16.mxu0 %v2462_v14 }
 0xc60   : > { %2133 = vmatpush3.bf16.msra.mxu0 %v2132_v22 }
 0xce1   : > { %v1570_v4 = vpop.xlane.xlu0 %1569 }
 0xce2   : > { %v1571_v5 = vmul.f32 0.015625, %v1570_v4 }
 0xce4   : > { %v1572_v6 = vsub.f32 %v1560_v3, %v1571_v5 }
 0xce6   : > { %v1573_v7 = vmul.f32 %v1572_v6, %v1572_v6 }
 0xce8   : > { %v1574_v8 = vsel %vm383_vm1, %v1573_v7, 0.0 }
 0xce9   : > { %1575 = vadd.xlane.f32.xlu0 %v1574_v8 }
 0xd76   : > { %v1576_v23 = vpop.xlane.xlu0 %1575 }
 0xd77   : > { %v1577_v24 = vmul.f32 0.015625, %v1576_v23 }
 0xd79   : > { %v1578_v25 = vadd.f32 1e-05, %v1577_v24 }
 0xd7b   : > { %2287 = vrsqrt.f32 %v1578_v25 }
 0xd85   : > { %v2288_v26 = vpop.eup %2287 }
 0xd86   : > { %v1580_v30 = vmul.f32 %v2288_v26, %v1572_v6 }
 0xd88   : > { %v1587_v32 = vmul.f32 %v1811_v29, %v1580_v30 }
 0xd8a   : > { %v1594_v33 = vadd.f32 %v1812_v31, %v1587_v32 }
 0xd8c   : > { %2044 = vmatmul.mubr.msk.f32.vlgmr.msra.gmra.mrb[0].mxu0 %vm383_vm1, %v1594_v33 }
 0xe5f   : > { %v1672_v35 = vpop.f32.mrb[0].mxu0 }
 0xe60   : > { %1676 = vst [vmem:[#allocation9] sm:$0xff] %v1672_v35  ;;  %v2045_v36 = vpop.f32.mrb[1].mxu0 }
 0xe61 PF: > { %p2185_p5 = scmp.eq.s32.totalorder %s2530_s9, 1  ;;  %s2465_s25 = smov [#allocation9]  }
 0xe62   : > { %s1684_s26 = sshll.u32 %s2465_s25, 4  ;;  %s1685_s26 = int_to_ptr.vmem [resolvable:$true] %s1684_s26 }
 0xe63   : > { %s2375_s27 = scalar_lea.vmem %s1685_s26, 128  ;;  %p2382_p2 = scmp.lt.s32.totalorder %s1685_s26, %s1685_s26 }
 0xe64   : > { %p2376_p6 = scmp.ne.s32.totalorder %s1685_s26, %s2375_s27  ;;  %p2383_p13 = scmp.lt.s32.totalorder %s2375_s27, %s2375_s27 }
 0xe66   : > { %p2377_p12 = pnand %p2376_p6, %p2185_p5  ;;  %p2384_p11 = por %p2383_p13, %p2382_p2 }
 0xe68   : > { %p2378_p0 = pneg %p2377_p12 }
 0xe6a   : > { %p2385_p3 = pnand %p2384_p11, %p2378_p0 }
 0xe6c   : > { %2388 = shalt.err (!%p2385_p3)
}
 0xe6d   : > { %s2389_s12 = scalar_lea.hbm %s2913_s8, 128 }
 0xe6e   : > { %p2390_p7 = scmp.ne.s32.totalorder %s2913_s8, %s2389_s12  ;;  %p2395_p9 = scmp.lt.u32.totalorder %s2389_s12, %s2913_s8 }
 0xe70   : > { %p2391_p10 = pnand %p2390_p7, %p2185_p5 }
 0xe72   : > { %p2392_p8 = pneg %p2391_p10 }
 0xe74   : > { %p2397_p1 = pnand %p2395_p9, %p2392_p8 }
 0xe76   : > { %2400 = shalt.err (!%p2397_p1)
}
 0xe77   : > { %2166 = dma.vmem_to_hbm [thread:$0]  (%p2185_p5), %s1685_s26, 128, %s2913_s8, [#allocation5]  }
 0xe78   : > { %2430 = dma.done.wait (%p2185_p5), [#allocation5], 128  }
 0xe79   : > { %2432 = vsyncadd (%p2185_p5), [#allocation5], 4294967168 }
 0xe7a PF: > { %p18_p4 = scmp.ge.s32.totalorder %s2558_s17, 4   ;;  %s2928_s27 = smov %s2439_s28 }
 0xe7b   : > { %s2929_s28 = smov %s2443_s29  ;;  %s2930_s29 = smov %s2617_s16 }
 0xe7c   : > { %s2931_s30 = smov %s2558_s17  ;;  %20 = sbr.rel (!%p18_p4) target bundleno = 4 (0x4), region = 112 }
 0xe83   :  { %1697 = vsyncpa [#allocation4], 1 }
 0xe84   :  { %1699 = vsyncpa [#allocation4 + $0x1], 1 }
 0xe85   :  { %1700 = vsyncpa [#allocation7], 1 }
 0xe86   :  { %1701 = vsyncpa [#allocation5], 1 }
 0xe87   :  { %1703 = vsyncpa [#allocation5 + $0x1], 1 }

</bundles_post_ra>
